<compile_context>
chip_gen: v6e
topology: v6e:2x2x1
jax: 0.10.0
libtpu: 0.0.40
codegen_flags: <defaults>
</compile_context>

<pallas_src>
import functools

import jax
import jax.numpy as jnp
from jax.experimental import pallas as pl
from jax.experimental.pallas import tpu as pltpu

LANE = 128
SUBLANE = 8
_MIN_VMEM_LIMIT = 16 * 1024 * 1024
_MAX_VMEM_LIMIT = 64 * 1024 * 1024    # v7x physical VMEM per TensorCore


def _rup(n, m):
    return ((n + m - 1) // m) * m


def _pad2d(a, rows, cols):
    r, c = a.shape
    return jnp.pad(a, ((0, rows - r), (0, cols - c)))


def _leaky_relu(x, negative_slope):
    return jnp.where(x > 0, x, negative_slope * x)


def _choose_tm(batch):
    """Batch tile: multiple of 8, <= 512.  Prefer (1) fewest padded rows,
    (2) an even grid >= 2 steps (so dimension_semantics=("parallel",) shards
    the batch across both v7x TensorCores), (3) larger tiles (fewer ~0.35us
    grid-step overheads)."""
    b8 = _rup(batch, SUBLANE)
    best_key, best_tm = None, b8
    for tm in range(SUBLANE, min(512, b8) + 1, SUBLANE):
        bp = _rup(batch, tm)
        steps = bp // tm
        key = (bp - batch, 0 if (steps >= 2 and steps % 2 == 0) else 1, -tm)
        if best_key is None or key < best_key:
            best_key, best_tm = key, tm
    return best_tm


# ----------------------------------------------------------------------------
# Fused kernel: encoder -> (mu|log_var) head -> reparam -> decoder.
# ----------------------------------------------------------------------------
def _cvae_fused_kernel(negative_slope, latent, compute_dtype,
                       x_ref, emb_ref, eps_ref,
                       ew1_ref, eb1_ref, ew2_ref, eb2_ref, wh_ref, bh_ref,
                       dw1z_ref, dw1e_ref, db1_ref, dw2_ref, db2_ref,
                       dw3_ref, db3_ref,
                       xpred_ref, mu_ref, lv_ref, z_ref):

    def mm(a, w_ref):
        # MXU matmul in compute_dtype (bf16 on v6e/v7x); f32 accumulation.
        return jnp.dot(a.astype(compute_dtype), w_ref[...],
                       preferred_element_type=jnp.float32)

    # ---- encoder: Linear + LeakyReLU x2 (bias / activation in f32, VPU) ----
    h = _leaky_relu(mm(x_ref[...], ew1_ref) + eb1_ref[...], negative_slope)
    h = _leaky_relu(mm(h, ew2_ref) + eb2_ref[...], negative_slope)

    # ---- fused heads: one MXU push producing [mu | log_var] ----------------
    heads = mm(h, wh_ref) + bh_ref[...]
    mu = heads[:, :latent]
    log_var = heads[:, latent:]

    # ---- reparameterization: z = eps * exp(0.5*log_var) + mu (f32 / EUP) ---
    z = eps_ref[...] * jnp.exp(0.5 * log_var) + mu

    mu_ref[...] = mu
    lv_ref[...] = log_var
    z_ref[...] = z

    # ---- decoder: layer-1 weight split (z-part | embedding-part) so
    #      torch.cat((z, embedded), dim=1) is never materialized -------------
    d = mm(z, dw1z_ref) + mm(emb_ref[...], dw1e_ref) + db1_ref[...]
    d = _leaky_relu(d, negative_slope)
    d = _leaky_relu(mm(d, dw2_ref) + db2_ref[...], negative_slope)
    xpred_ref[...] = mm(d, dw3_ref) + db3_ref[...]


# ----------------------------------------------------------------------------
# One-time weight preparation (hoisted out of the per-forward path).
# ----------------------------------------------------------------------------
def pack_params(enc_params, dec_params, emb_tables, compute_dtype=jnp.float32):
    """Pad hidden-layer weight OUTPUT axes to 128 lanes (padded rows/cols are
    exactly zero -> nothing leaks between layers), fuse the mu|log_var head
    into one weight, split decoder layer-1 along its input axis, and cast
    matmul operands to `compute_dtype` (bf16 recommended on v6e/v7x).  Biases
    stay f32 (added to the f32 MXU accumulator)."""
    latent = int(enc_params["wmu"].shape[1])
    emb_total = sum(int(t.shape[1]) for t in emb_tables)
    din = int(enc_params["w1"].shape[0])
    e0p = _rup(enc_params["w1"].shape[1], LANE)
    e1p = _rup(enc_params["w2"].shape[1], LANE)
    d0p = _rup(dec_params["w1"].shape[1], LANE)
    d1p = _rup(dec_params["w2"].shape[1], LANE)

    wd = lambda a: a.astype(compute_dtype)
    f32 = lambda a: a.astype(jnp.float32)
    dw1 = dec_params["w1"]

    return {
        "ew1": wd(_pad2d(enc_params["w1"], din, e0p)),
        "eb1": f32(_pad2d(enc_params["b1"], 1, e0p)),
        "ew2": wd(_pad2d(enc_params["w2"], e0p, e1p)),
        "eb2": f32(_pad2d(enc_params["b2"], 1, e1p)),
        "wh": wd(jnp.concatenate([_pad2d(enc_params["wmu"], e1p, latent),
                                  _pad2d(enc_params["wlv"], e1p, latent)],
                                 axis=1)),
        "bh": f32(jnp.concatenate([enc_params["bmu"], enc_params["blv"]],
                                  axis=1)),
        "dw1z": wd(_pad2d(dw1[:latent, :], latent, d0p)),
        "dw1e": wd(_pad2d(dw1[latent:, :], emb_total, d0p)),
        "db1": f32(_pad2d(dec_params["b1"], 1, d0p)),
        "dw2": wd(_pad2d(dec_params["w2"], d0p, d1p)),
        "db2": f32(_pad2d(dec_params["b2"], 1, d1p)),
        "dw3": wd(_pad2d(dec_params["w3"], d1p, din)),
        "db3": f32(dec_params["b3"]),
        "emb_tables": [wd(t) for t in emb_tables],
        "meta": dict(latent=latent, emb_total=emb_total, din=din,
                     compute_dtype=compute_dtype),
    }


# ----------------------------------------------------------------------------
# Full CVAE forward.  Embedding gathers (tiny) stay in plain JAX; everything
# else runs inside the single fused kernel.
# ----------------------------------------------------------------------------
def cvae_forward(x, x_cat, eps, packed, negative_slope=0.0):
    meta = packed["meta"]
    latent, emb_total, din = meta["latent"], meta["emb_total"], meta["din"]
    cdtype = meta["compute_dtype"]
    B = x.shape[0]

    # categorical embedding lookups (a few KB of XLA gather glue)
    # TODO(synk): could move in-kernel via PrefetchScalarGridSpec scalar
    # prefetch of x_cat + VMEM-resident tables; kept in XLA for robustness.
    tables = packed["emb_tables"]
    embs = [jnp.take(t, x_cat[:, i], axis=0) for i, t in enumerate(tables)]
    embedded = embs[0] if len(embs) == 1 else jnp.concatenate(embs, axis=1)

    TM = _choose_tm(B)
    B_p = _rup(B, TM)
    grid = (B_p // TM,)

    def pad_rows(a, dtype):
        a = a.astype(dtype)
        if a.shape[0] != B_p:
            a = jnp.pad(a, ((0, B_p - a.shape[0]), (0, 0)))
        return a

    # Activations stay UN-padded on the lane axis (block last dim == full dim
    # satisfies the (8,128) rule; Mosaic pads K inside vregs for free).
    xp = pad_rows(x, cdtype)
    embp = pad_rows(embedded, cdtype)
    epsp = pad_rows(eps, jnp.float32)

    weight_names = ("ew1", "eb1", "ew2", "eb2", "wh", "bh",
                    "dw1z", "dw1e", "db1", "dw2", "db2", "dw3", "db3")
    weights = tuple(packed[k] for k in weight_names)

    def row_spec(cols):
        return pl.BlockSpec((TM, cols), lambda i: (i, 0))

    def weight_spec(arr, buffers):
        # Constant index_map -> weight resident across the whole batch grid;
        # single-buffered so it doesn't take 2x VMEM.
        if buffers is None:
            return pl.BlockSpec(arr.shape, lambda i: (0, 0))
        return pl.BlockSpec(arr.shape, lambda i: (0, 0),
                            pipeline_mode=pl.Buffered(buffers))

    out_shape = (jax.ShapeDtypeStruct((B_p, din), jnp.float32),
                 jax.ShapeDtypeStruct((B_p, latent), jnp.float32),
                 jax.ShapeDtypeStruct((B_p, latent), jnp.float32),
                 jax.ShapeDtypeStruct((B_p, latent), jnp.float32))
    out_specs = (row_spec(din), row_spec(latent),
                 row_spec(latent), row_spec(latent))

    # VMEM budget: 1x resident weights + 2x (double-buffered) activation and
    # output tiles, 2x headroom, clamped to [16 MiB, 64 MiB (v7x physical)].
    act_itemsize = jnp.dtype(cdtype).itemsize
    weight_bytes = sum(int(a.size) * a.dtype.itemsize for a in weights)
    in_tile_bytes = TM * (din + emb_total) * act_itemsize + TM * latent * 4
    out_tile_bytes = TM * (din + 3 * latent) * 4
    need = weight_bytes + 2 * (in_tile_bytes + out_tile_bytes)
    vmem_limit = int(min(max(2 * need, _MIN_VMEM_LIMIT), _MAX_VMEM_LIMIT))

    e0p = packed["ew1"].shape[1]
    e1p = packed["ew2"].shape[1]
    d0p = packed["dw1z"].shape[1]
    d1p = packed["dw2"].shape[1]
    flops = 2 * B_p * (din * e0p + e0p * e1p + e1p * 2 * latent
                       + latent * d0p + emb_total * d0p
                       + d0p * d1p + d1p * din)
    cost = pl.CostEstimate(
        flops=int(flops), transcendentals=int(B_p * latent),
        bytes_accessed=int(weight_bytes
                           + grid[0] * (in_tile_bytes + out_tile_bytes)))

    kernel = functools.partial(_cvae_fused_kernel, negative_slope, latent,
                               cdtype)

    def call(weight_buffers):
        in_specs = ([row_spec(din), row_spec(emb_total), row_spec(latent)]
                    + [weight_spec(a, weight_buffers) for a in weights])
        return pl.pallas_call(
            kernel,
            grid=grid,
            in_specs=in_specs,
            out_specs=out_specs,
            out_shape=out_shape,
            compiler_params=pltpu.CompilerParams(
                dimension_semantics=("parallel",),
                vmem_limit_bytes=vmem_limit),
            cost_estimate=cost,
        )(xp, embp, epsp, *weights)

    try:
        x_pred_p, mu_p, lv_p, z_p = call(1)       # single-buffered weights
    except Exception:
        x_pred_p, mu_p, lv_p, z_p = call(None)    # default pipelining fallback

    return x_pred_p[:B], mu_p[:B], lv_p[:B], z_p[:B]


# ----------------------------------------------------------------------------
# Deterministic synthetic parameters (shapes match the nn.Module constructor;
# Linear weights stored transposed as (in, out)).
# ----------------------------------------------------------------------------
def init_params(key, input_dims, encoder_dims, latent_dims, vocab_sizes):
    decoder_dims = encoder_dims[::-1]
    emb_dims = [int(vs ** 0.5) + 1 for vs in vocab_sizes]
    input_dec_dims = latent_dims + sum(emb_dims)

    keys = iter(jax.random.split(key, 32))

    def lin(in_d, out_d):
        w = 0.1 * jax.random.normal(next(keys), (in_d, out_d), jnp.float32)
        b = 0.1 * jax.random.normal(next(keys), (1, out_d), jnp.float32)
        return w, b

    w1, b1 = lin(input_dims, encoder_dims[0])
    w2, b2 = lin(encoder_dims[0], encoder_dims[1])
    wmu, bmu = lin(encoder_dims[-1], latent_dims)
    wlv, blv = lin(encoder_dims[-1], latent_dims)
    enc_params = dict(w1=w1, b1=b1, w2=w2, b2=b2,
                      wmu=wmu, bmu=bmu, wlv=wlv, blv=blv)

    dw1, db1 = lin(input_dec_dims, decoder_dims[0])
    dw2, db2 = lin(decoder_dims[0], decoder_dims[1])
    dw3, db3 = lin(decoder_dims[1], input_dims)
    dec_params = dict(w1=dw1, b1=db1, w2=dw2, b2=db2, w3=dw3, b3=db3)

    emb_tables = [0.1 * jax.random.normal(next(keys), (vs, ed), jnp.float32)
                  for vs, ed in zip(vocab_sizes, emb_dims)]
    return enc_params, dec_params, emb_tables


if __name__ == "__main__":
    # Small synthetic config consistent with the module's constructor.
    batch = 8
    input_dims = 16
    encoder_dims = [32, 16]
    latent_dims = 8
    vocab_sizes = [10, 5]          # embedded dims: 4 + 3 = 7 -> dec_in = 15
    negative_slope = 0.1

    key = jax.random.PRNGKey(0)
    k_param, k_x, k_cat, k_eps = jax.random.split(key, 4)

    enc_params, dec_params, emb_tables = init_params(
        k_param, input_dims, encoder_dims, latent_dims, vocab_sizes)

    x = jax.random.normal(k_x, (batch, input_dims), jnp.float32)
    x_cat = jnp.stack(
        [jax.random.randint(jax.random.fold_in(k_cat, i), (batch,), 0, vs)
         for i, vs in enumerate(vocab_sizes)], axis=1).astype(jnp.int32)
    eps = jax.random.normal(k_eps, (batch, latent_dims), jnp.float32)

    # pure-JAX reference (same math, unpadded, f32)
    def ref_forward(x, x_cat, eps):
        def leaky(v):
            return jnp.where(v > 0, v, negative_slope * v)
        h = leaky(x @ enc_params["w1"] + enc_params["b1"])
        h = leaky(h @ enc_params["w2"] + enc_params["b2"])
        mu_r = h @ enc_params["wmu"] + enc_params["bmu"]
        lv_r = h @ enc_params["wlv"] + enc_params["blv"]
        z_r = eps * jnp.exp(0.5 * lv_r) + mu_r
        emb = jnp.concatenate([jnp.take(t, x_cat[:, i], axis=0)
                               for i, t in enumerate(emb_tables)], axis=1)
        d = jnp.concatenate([z_r, emb], axis=1)
        d = leaky(d @ dec_params["w1"] + dec_params["b1"])
        d = leaky(d @ dec_params["w2"] + dec_params["b2"])
        return d @ dec_params["w3"] + dec_params["b3"], mu_r, lv_r, z_r

    xr, mur, lvr, zr = ref_forward(x, x_cat, eps)

    # ---- f32 path (portable: v5e keeps f32 MXU/VPU) ------------------------
    packed_f32 = pack_params(enc_params, dec_params, emb_tables, jnp.float32)
    x_pred, mu, log_var, z = cvae_forward(
        x, x_cat, eps, packed_f32, negative_slope)
    jax.block_until_ready((x_pred, mu, log_var, z))

    assert x_pred.shape == (batch, input_dims)
    assert mu.shape == (batch, latent_dims)
    assert log_var.shape == (batch, latent_dims)
    assert z.shape == (batch, latent_dims)
    assert bool(jnp.all(jnp.isfinite(x_pred)))
    assert bool(jnp.allclose(mu, mur, atol=2e-2, rtol=2e-2))
    assert bool(jnp.allclose(log_var, lvr, atol=2e-2, rtol=2e-2))
    assert bool(jnp.allclose(z, zr, atol=2e-2, rtol=2e-2))
    assert bool(jnp.allclose(x_pred, xr, atol=2e-2, rtol=2e-2))

    # ---- bf16 MXU path (v6e / v7x): bf16 matmul operands, f32 accumulation,
    #      LeakyReLU / exp / reparameterization stay in f32 ------------------
    packed_bf16 = pack_params(enc_params, dec_params, emb_tables, jnp.bfloat16)
    xb, mub, lvb, zb = cvae_forward(
        x, x_cat, eps, packed_bf16, negative_slope)
    jax.block_until_ready((xb, mub, lvb, zb))
    assert bool(jnp.all(jnp.isfinite(xb)))
    assert bool(jnp.allclose(xb, xr, atol=1e-1, rtol=1e-1))
    assert bool(jnp.allclose(zb, zr, atol=1e-1, rtol=1e-1))

    print("KERNEL_OK")
</pallas_src>

<mosaic_0001>
module attributes {stable_mosaic.version = 11 : i64} {
  func.func @_cvae_fused_kernel(%arg0: i32, %arg1: memref<8x16xf32, #tpu.memory_space<vmem>>, %arg2: memref<8x7xf32, #tpu.memory_space<vmem>>, %arg3: memref<8x8xf32, #tpu.memory_space<vmem>>, %arg4: memref<16x128xf32, #tpu.memory_space<vmem>>, %arg5: memref<1x128xf32, #tpu.memory_space<vmem>>, %arg6: memref<128x128xf32, #tpu.memory_space<vmem>>, %arg7: memref<1x128xf32, #tpu.memory_space<vmem>>, %arg8: memref<128x16xf32, #tpu.memory_space<vmem>>, %arg9: memref<1x16xf32, #tpu.memory_space<vmem>>, %arg10: memref<8x128xf32, #tpu.memory_space<vmem>>, %arg11: memref<7x128xf32, #tpu.memory_space<vmem>>, %arg12: memref<1x128xf32, #tpu.memory_space<vmem>>, %arg13: memref<128x128xf32, #tpu.memory_space<vmem>>, %arg14: memref<1x128xf32, #tpu.memory_space<vmem>>, %arg15: memref<128x16xf32, #tpu.memory_space<vmem>>, %arg16: memref<1x16xf32, #tpu.memory_space<vmem>>, %arg17: memref<8x16xf32, #tpu.memory_space<vmem>>, %arg18: memref<8x8xf32, #tpu.memory_space<vmem>>, %arg19: memref<8x8xf32, #tpu.memory_space<vmem>>, %arg20: memref<8x8xf32, #tpu.memory_space<vmem>>) attributes {dimension_semantics = [#tpu.dimension_semantics<parallel>], iteration_bounds = array<i64: 1>, scalar_prefetch = 0 : i64, scratch_operands = 0 : i64, tpu.core_type = #tpu.core_type<tc>, window_params = [{transform_indices = @transform_0, window_bounds = array<i64: 8, 16>}, {transform_indices = @transform_1, window_bounds = array<i64: 8, 7>}, {transform_indices = @transform_2, window_bounds = array<i64: 8, 8>}, {pipeline_mode = #tpu.pipeline_mode<synchronous>, transform_indices = @transform_3, window_bounds = array<i64: 16, 128>}, {pipeline_mode = #tpu.pipeline_mode<synchronous>, transform_indices = @transform_4, window_bounds = array<i64: 1, 128>}, {pipeline_mode = #tpu.pipeline_mode<synchronous>, transform_indices = @transform_5, window_bounds = array<i64: 128, 128>}, {pipeline_mode = #tpu.pipeline_mode<synchronous>, transform_indices = @transform_6, window_bounds = array<i64: 1, 128>}, {pipeline_mode = #tpu.pipeline_mode<synchronous>, transform_indices = @transform_7, window_bounds = array<i64: 128, 16>}, {pipeline_mode = #tpu.pipeline_mode<synchronous>, transform_indices = @transform_8, window_bounds = array<i64: 1, 16>}, {pipeline_mode = #tpu.pipeline_mode<synchronous>, transform_indices = @transform_9, window_bounds = array<i64: 8, 128>}, {pipeline_mode = #tpu.pipeline_mode<synchronous>, transform_indices = @transform_10, window_bounds = array<i64: 7, 128>}, {pipeline_mode = #tpu.pipeline_mode<synchronous>, transform_indices = @transform_11, window_bounds = array<i64: 1, 128>}, {pipeline_mode = #tpu.pipeline_mode<synchronous>, transform_indices = @transform_12, window_bounds = array<i64: 128, 128>}, {pipeline_mode = #tpu.pipeline_mode<synchronous>, transform_indices = @transform_13, window_bounds = array<i64: 1, 128>}, {pipeline_mode = #tpu.pipeline_mode<synchronous>, transform_indices = @transform_14, window_bounds = array<i64: 128, 16>}, {pipeline_mode = #tpu.pipeline_mode<synchronous>, transform_indices = @transform_15, window_bounds = array<i64: 1, 16>}, {transform_indices = @transform_16, window_bounds = array<i64: 8, 16>}, {transform_indices = @transform_17, window_bounds = array<i64: 8, 8>}, {transform_indices = @transform_18, window_bounds = array<i64: 8, 8>}, {transform_indices = @transform_19, window_bounds = array<i64: 8, 8>}]} {
    %c0 = arith.constant 0 : index
    %c0_0 = arith.constant 0 : index
    %0 = vector.load %arg1[%c0, %c0_0] : memref<8x16xf32, #tpu.memory_space<vmem>>, vector<8x16xf32>
    %c0_1 = arith.constant 0 : index
    %c0_2 = arith.constant 0 : index
    %1 = vector.load %arg4[%c0_1, %c0_2] : memref<16x128xf32, #tpu.memory_space<vmem>>, vector<16x128xf32>
    %cst = arith.constant dense<0.000000e+00> : vector<8x128xf32>
    %2 = tpu.matmul %0, %1, %cst {dimension_numbers = #tpu.dot_dimension_numbers<[1], [0], [0], [1], [0, 0, 1, 1], [], []>} : vector<8x16xf32>, vector<16x128xf32>, vector<8x128xf32> -> vector<8x128xf32>
    %c0_3 = arith.constant 0 : index
    %c0_4 = arith.constant 0 : index
    %3 = vector.load %arg5[%c0_3, %c0_4] : memref<1x128xf32, #tpu.memory_space<vmem>>, vector<1x128xf32>
    %4 = vector.broadcast %3 : vector<1x128xf32> to vector<8x128xf32>
    %5 = arith.addf %2, %4 : vector<8x128xf32>
    %cst_5 = arith.constant 0.000000e+00 : f32
    %6 = vector.broadcast %cst_5 : f32 to vector<8x128xf32>
    %7 = arith.cmpf ogt, %5, %6 : vector<8x128xf32>
    %cst_6 = arith.constant 1.000000e-01 : f32
    %8 = vector.broadcast %cst_6 : f32 to vector<8x128xf32>
    %9 = arith.mulf %8, %5 : vector<8x128xf32>
    %10 = arith.select %7, %5, %9 : vector<8x128xi1>, vector<8x128xf32>
    %c0_7 = arith.constant 0 : index
    %c0_8 = arith.constant 0 : index
    %11 = vector.load %arg6[%c0_7, %c0_8] : memref<128x128xf32, #tpu.memory_space<vmem>>, vector<128x128xf32>
    %cst_9 = arith.constant dense<0.000000e+00> : vector<8x128xf32>
    %12 = tpu.matmul %10, %11, %cst_9 {dimension_numbers = #tpu.dot_dimension_numbers<[1], [0], [0], [1], [0, 0, 1, 1], [], []>} : vector<8x128xf32>, vector<128x128xf32>, vector<8x128xf32> -> vector<8x128xf32>
    %c0_10 = arith.constant 0 : index
    %c0_11 = arith.constant 0 : index
    %13 = vector.load %arg7[%c0_10, %c0_11] : memref<1x128xf32, #tpu.memory_space<vmem>>, vector<1x128xf32>
    %14 = vector.broadcast %13 : vector<1x128xf32> to vector<8x128xf32>
    %15 = arith.addf %12, %14 : vector<8x128xf32>
    %cst_12 = arith.constant 0.000000e+00 : f32
    %16 = vector.broadcast %cst_12 : f32 to vector<8x128xf32>
    %17 = arith.cmpf ogt, %15, %16 : vector<8x128xf32>
    %cst_13 = arith.constant 1.000000e-01 : f32
    %18 = vector.broadcast %cst_13 : f32 to vector<8x128xf32>
    %19 = arith.mulf %18, %15 : vector<8x128xf32>
    %20 = arith.select %17, %15, %19 : vector<8x128xi1>, vector<8x128xf32>
    %c0_14 = arith.constant 0 : index
    %c0_15 = arith.constant 0 : index
    %21 = vector.load %arg8[%c0_14, %c0_15] : memref<128x16xf32, #tpu.memory_space<vmem>>, vector<128x16xf32>
    %cst_16 = arith.constant dense<0.000000e+00> : vector<8x16xf32>
    %22 = tpu.matmul %20, %21, %cst_16 {dimension_numbers = #tpu.dot_dimension_numbers<[1], [0], [0], [1], [0, 0, 1, 1], [], []>} : vector<8x128xf32>, vector<128x16xf32>, vector<8x16xf32> -> vector<8x16xf32>
    %c0_17 = arith.constant 0 : index
    %c0_18 = arith.constant 0 : index
    %23 = vector.load %arg9[%c0_17, %c0_18] : memref<1x16xf32, #tpu.memory_space<vmem>>, vector<1x16xf32>
    %24 = vector.broadcast %23 : vector<1x16xf32> to vector<8x16xf32>
    %25 = arith.addf %22, %24 : vector<8x16xf32>
    %26 = vector.extract_strided_slice %25 {offsets = [0, 0], sizes = [8, 8], strides = [1, 1]} : vector<8x16xf32> to vector<8x8xf32>
    %27 = vector.extract_strided_slice %25 {offsets = [0, 8], sizes = [8, 8], strides = [1, 1]} : vector<8x16xf32> to vector<8x8xf32>
    %c0_19 = arith.constant 0 : index
    %c0_20 = arith.constant 0 : index
    %28 = vector.load %arg3[%c0_19, %c0_20] : memref<8x8xf32, #tpu.memory_space<vmem>>, vector<8x8xf32>
    %cst_21 = arith.constant 5.000000e-01 : f32
    %29 = vector.broadcast %cst_21 : f32 to vector<8x8xf32>
    %30 = arith.mulf %29, %27 : vector<8x8xf32>
    %31 = math.exp %30 : vector<8x8xf32>
    %32 = arith.mulf %28, %31 : vector<8x8xf32>
    %33 = arith.addf %32, %26 : vector<8x8xf32>
    %c0_22 = arith.constant 0 : index
    %c0_23 = arith.constant 0 : index
    %34 = vector.load %arg18[%c0_22, %c0_23] : memref<8x8xf32, #tpu.memory_space<vmem>>, vector<8x8xf32>
    tpu.vector_store %arg18[%c0_22, %c0_23], %26 {strides = array<i32>} : memref<8x8xf32, #tpu.memory_space<vmem>>, vector<8x8xf32>,
    %c0_24 = arith.constant 0 : index
    %c0_25 = arith.constant 0 : index
    %35 = vector.load %arg19[%c0_24, %c0_25] : memref<8x8xf32, #tpu.memory_space<vmem>>, vector<8x8xf32>
    tpu.vector_store %arg19[%c0_24, %c0_25], %27 {strides = array<i32>} : memref<8x8xf32, #tpu.memory_space<vmem>>, vector<8x8xf32>,
    %c0_26 = arith.constant 0 : index
    %c0_27 = arith.constant 0 : index
    %36 = vector.load %arg20[%c0_26, %c0_27] : memref<8x8xf32, #tpu.memory_space<vmem>>, vector<8x8xf32>
    tpu.vector_store %arg20[%c0_26, %c0_27], %33 {strides = array<i32>} : memref<8x8xf32, #tpu.memory_space<vmem>>, vector<8x8xf32>,
    %c0_28 = arith.constant 0 : index
    %c0_29 = arith.constant 0 : index
    %37 = vector.load %arg10[%c0_28, %c0_29] : memref<8x128xf32, #tpu.memory_space<vmem>>, vector<8x128xf32>
    %cst_30 = arith.constant dense<0.000000e+00> : vector<8x128xf32>
    %38 = tpu.matmul %33, %37, %cst_30 {dimension_numbers = #tpu.dot_dimension_numbers<[1], [0], [0], [1], [0, 0, 1, 1], [], []>} : vector<8x8xf32>, vector<8x128xf32>, vector<8x128xf32> -> vector<8x128xf32>
    %c0_31 = arith.constant 0 : index
    %c0_32 = arith.constant 0 : index
    %39 = vector.load %arg2[%c0_31, %c0_32] : memref<8x7xf32, #tpu.memory_space<vmem>>, vector<8x7xf32>
    %c0_33 = arith.constant 0 : index
    %c0_34 = arith.constant 0 : index
    %40 = vector.load %arg11[%c0_33, %c0_34] : memref<7x128xf32, #tpu.memory_space<vmem>>, vector<7x128xf32>
    %cst_35 = arith.constant dense<0.000000e+00> : vector<8x128xf32>
    %41 = tpu.matmul %39, %40, %cst_35 {dimension_numbers = #tpu.dot_dimension_numbers<[1], [0], [0], [1], [0, 0, 1, 1], [], []>} : vector<8x7xf32>, vector<7x128xf32>, vector<8x128xf32> -> vector<8x128xf32>
    %42 = arith.addf %38, %41 : vector<8x128xf32>
    %c0_36 = arith.constant 0 : index
    %c0_37 = arith.constant 0 : index
    %43 = vector.load %arg12[%c0_36, %c0_37] : memref<1x128xf32, #tpu.memory_space<vmem>>, vector<1x128xf32>
    %44 = vector.broadcast %43 : vector<1x128xf32> to vector<8x128xf32>
    %45 = arith.addf %42, %44 : vector<8x128xf32>
    %cst_38 = arith.constant 0.000000e+00 : f32
    %46 = vector.broadcast %cst_38 : f32 to vector<8x128xf32>
    %47 = arith.cmpf ogt, %45, %46 : vector<8x128xf32>
    %cst_39 = arith.constant 1.000000e-01 : f32
    %48 = vector.broadcast %cst_39 : f32 to vector<8x128xf32>
    %49 = arith.mulf %48, %45 : vector<8x128xf32>
    %50 = arith.select %47, %45, %49 : vector<8x128xi1>, vector<8x128xf32>
    %c0_40 = arith.constant 0 : index
    %c0_41 = arith.constant 0 : index
    %51 = vector.load %arg13[%c0_40, %c0_41] : memref<128x128xf32, #tpu.memory_space<vmem>>, vector<128x128xf32>
    %cst_42 = arith.constant dense<0.000000e+00> : vector<8x128xf32>
    %52 = tpu.matmul %50, %51, %cst_42 {dimension_numbers = #tpu.dot_dimension_numbers<[1], [0], [0], [1], [0, 0, 1, 1], [], []>} : vector<8x128xf32>, vector<128x128xf32>, vector<8x128xf32> -> vector<8x128xf32>
    %c0_43 = arith.constant 0 : index
    %c0_44 = arith.constant 0 : index
    %53 = vector.load %arg14[%c0_43, %c0_44] : memref<1x128xf32, #tpu.memory_space<vmem>>, vector<1x128xf32>
    %54 = vector.broadcast %53 : vector<1x128xf32> to vector<8x128xf32>
    %55 = arith.addf %52, %54 : vector<8x128xf32>
    %cst_45 = arith.constant 0.000000e+00 : f32
    %56 = vector.broadcast %cst_45 : f32 to vector<8x128xf32>
    %57 = arith.cmpf ogt, %55, %56 : vector<8x128xf32>
    %cst_46 = arith.constant 1.000000e-01 : f32
    %58 = vector.broadcast %cst_46 : f32 to vector<8x128xf32>
    %59 = arith.mulf %58, %55 : vector<8x128xf32>
    %60 = arith.select %57, %55, %59 : vector<8x128xi1>, vector<8x128xf32>
    %c0_47 = arith.constant 0 : index
    %c0_48 = arith.constant 0 : index
    %61 = vector.load %arg15[%c0_47, %c0_48] : memref<128x16xf32, #tpu.memory_space<vmem>>, vector<128x16xf32>
    %cst_49 = arith.constant dense<0.000000e+00> : vector<8x16xf32>
    %62 = tpu.matmul %60, %61, %cst_49 {dimension_numbers = #tpu.dot_dimension_numbers<[1], [0], [0], [1], [0, 0, 1, 1], [], []>} : vector<8x128xf32>, vector<128x16xf32>, vector<8x16xf32> -> vector<8x16xf32>
    %c0_50 = arith.constant 0 : index
    %c0_51 = arith.constant 0 : index
    %63 = vector.load %arg16[%c0_50, %c0_51] : memref<1x16xf32, #tpu.memory_space<vmem>>, vector<1x16xf32>
    %64 = vector.broadcast %63 : vector<1x16xf32> to vector<8x16xf32>
    %65 = arith.addf %62, %64 : vector<8x16xf32>
    %c0_52 = arith.constant 0 : index
    %c0_53 = arith.constant 0 : index
    %66 = vector.load %arg17[%c0_52, %c0_53] : memref<8x16xf32, #tpu.memory_space<vmem>>, vector<8x16xf32>
    tpu.vector_store %arg17[%c0_52, %c0_53], %65 {strides = array<i32>} : memref<8x16xf32, #tpu.memory_space<vmem>>, vector<8x16xf32>,
    return
  }
  func.func @transform_0(%arg0: i32) -> (i32, i32) {
    %c0_i32 = arith.constant 0 : i32
    %c0_i32_0 = arith.constant 0 : i32
    return %arg0, %c0_i32 : i32, i32
  }
  func.func @transform_1(%arg0: i32) -> (i32, i32) {
    %c0_i32 = arith.constant 0 : i32
    %c0_i32_0 = arith.constant 0 : i32
    return %arg0, %c0_i32 : i32, i32
  }
  func.func @transform_2(%arg0: i32) -> (i32, i32) {
    %c0_i32 = arith.constant 0 : i32
    %c0_i32_0 = arith.constant 0 : i32
    return %arg0, %c0_i32 : i32, i32
  }
  func.func @transform_3(%arg0: i32) -> (i32, i32) {
    %c0_i32 = arith.constant 0 : i32
    %c0_i32_0 = arith.constant 0 : i32
    %c0_i32_1 = arith.constant 0 : i32
    return %c0_i32, %c0_i32_0 : i32, i32
  }
  func.func @transform_4(%arg0: i32) -> (i32, i32) {
    %c0_i32 = arith.constant 0 : i32
    %c0_i32_0 = arith.constant 0 : i32
    %c0_i32_1 = arith.constant 0 : i32
    return %c0_i32, %c0_i32_0 : i32, i32
  }
  func.func @transform_5(%arg0: i32) -> (i32, i32) {
    %c0_i32 = arith.constant 0 : i32
    %c0_i32_0 = arith.constant 0 : i32
    %c0_i32_1 = arith.constant 0 : i32
    return %c0_i32, %c0_i32_0 : i32, i32
  }
  func.func @transform_6(%arg0: i32) -> (i32, i32) {
    %c0_i32 = arith.constant 0 : i32
    %c0_i32_0 = arith.constant 0 : i32
    %c0_i32_1 = arith.constant 0 : i32
    return %c0_i32, %c0_i32_0 : i32, i32
  }
  func.func @transform_7(%arg0: i32) -> (i32, i32) {
    %c0_i32 = arith.constant 0 : i32
    %c0_i32_0 = arith.constant 0 : i32
    %c0_i32_1 = arith.constant 0 : i32
    return %c0_i32, %c0_i32_0 : i32, i32
  }
  func.func @transform_8(%arg0: i32) -> (i32, i32) {
    %c0_i32 = arith.constant 0 : i32
    %c0_i32_0 = arith.constant 0 : i32
    %c0_i32_1 = arith.constant 0 : i32
    return %c0_i32, %c0_i32_0 : i32, i32
  }
  func.func @transform_9(%arg0: i32) -> (i32, i32) {
    %c0_i32 = arith.constant 0 : i32
    %c0_i32_0 = arith.constant 0 : i32
    %c0_i32_1 = arith.constant 0 : i32
    return %c0_i32, %c0_i32_0 : i32, i32
  }
  func.func @transform_10(%arg0: i32) -> (i32, i32) {
    %c0_i32 = arith.constant 0 : i32
    %c0_i32_0 = arith.constant 0 : i32
    %c0_i32_1 = arith.constant 0 : i32
    return %c0_i32, %c0_i32_0 : i32, i32
  }
  func.func @transform_11(%arg0: i32) -> (i32, i32) {
    %c0_i32 = arith.constant 0 : i32
    %c0_i32_0 = arith.constant 0 : i32
    %c0_i32_1 = arith.constant 0 : i32
    return %c0_i32, %c0_i32_0 : i32, i32
  }
  func.func @transform_12(%arg0: i32) -> (i32, i32) {
    %c0_i32 = arith.constant 0 : i32
    %c0_i32_0 = arith.constant 0 : i32
    %c0_i32_1 = arith.constant 0 : i32
    return %c0_i32, %c0_i32_0 : i32, i32
  }
  func.func @transform_13(%arg0: i32) -> (i32, i32) {
    %c0_i32 = arith.constant 0 : i32
    %c0_i32_0 = arith.constant 0 : i32
    %c0_i32_1 = arith.constant 0 : i32
    return %c0_i32, %c0_i32_0 : i32, i32
  }
  func.func @transform_14(%arg0: i32) -> (i32, i32) {
    %c0_i32 = arith.constant 0 : i32
    %c0_i32_0 = arith.constant 0 : i32
    %c0_i32_1 = arith.constant 0 : i32
    return %c0_i32, %c0_i32_0 : i32, i32
  }
  func.func @transform_15(%arg0: i32) -> (i32, i32) {
    %c0_i32 = arith.constant 0 : i32
    %c0_i32_0 = arith.constant 0 : i32
    %c0_i32_1 = arith.constant 0 : i32
    return %c0_i32, %c0_i32_0 : i32, i32
  }
  func.func @transform_16(%arg0: i32) -> (i32, i32) {
    %c0_i32 = arith.constant 0 : i32
    %c0_i32_0 = arith.constant 0 : i32
    return %arg0, %c0_i32 : i32, i32
  }
  func.func @transform_17(%arg0: i32) -> (i32, i32) {
    %c0_i32 = arith.constant 0 : i32
    %c0_i32_0 = arith.constant 0 : i32
    return %arg0, %c0_i32 : i32, i32
  }
  func.func @transform_18(%arg0: i32) -> (i32, i32) {
    %c0_i32 = arith.constant 0 : i32
    %c0_i32_0 = arith.constant 0 : i32
    return %arg0, %c0_i32 : i32, i32
  }
  func.func @transform_19(%arg0: i32) -> (i32, i32) {
    %c0_i32 = arith.constant 0 : i32
    %c0_i32_0 = arith.constant 0 : i32
    return %arg0, %c0_i32 : i32, i32
  }
}

module attributes {stable_mosaic.version = 11 : i64} {
  func.func @_cvae_fused_kernel(%arg0: i32, %arg1: memref<8x16xf32, #tpu.memory_space<vmem>>, %arg2: memref<8x7xf32, #tpu.memory_space<vmem>>, %arg3: memref<8x8xf32, #tpu.memory_space<vmem>>, %arg4: memref<16x128xf32, #tpu.memory_space<vmem>>, %arg5: memref<1x128xf32, #tpu.memory_space<vmem>>, %arg6: memref<128x128xf32, #tpu.memory_space<vmem>>, %arg7: memref<1x128xf32, #tpu.memory_space<vmem>>, %arg8: memref<128x16xf32, #tpu.memory_space<vmem>>, %arg9: memref<1x16xf32, #tpu.memory_space<vmem>>, %arg10: memref<8x128xf32, #tpu.memory_space<vmem>>, %arg11: memref<7x128xf32, #tpu.memory_space<vmem>>, %arg12: memref<1x128xf32, #tpu.memory_space<vmem>>, %arg13: memref<128x128xf32, #tpu.memory_space<vmem>>, %arg14: memref<1x128xf32, #tpu.memory_space<vmem>>, %arg15: memref<128x16xf32, #tpu.memory_space<vmem>>, %arg16: memref<1x16xf32, #tpu.memory_space<vmem>>, %arg17: memref<8x16xf32, #tpu.memory_space<vmem>>, %arg18: memref<8x8xf32, #tpu.memory_space<vmem>>, %arg19: memref<8x8xf32, #tpu.memory_space<vmem>>, %arg20: memref<8x8xf32, #tpu.memory_space<vmem>>) attributes {dimension_semantics = [#tpu.dimension_semantics<parallel>], iteration_bounds = array<i64: 1>, scalar_prefetch = 0 : i64, scratch_operands = 0 : i64, tpu.core_type = #tpu.core_type<tc>, window_params = [{transform_indices = @transform_0, window_bounds = array<i64: 8, 16>}, {transform_indices = @transform_1, window_bounds = array<i64: 8, 7>}, {transform_indices = @transform_2, window_bounds = array<i64: 8, 8>}, {pipeline_mode = #tpu.pipeline_mode<synchronous>, transform_indices = @transform_3, window_bounds = array<i64: 16, 128>}, {pipeline_mode = #tpu.pipeline_mode<synchronous>, transform_indices = @transform_4, window_bounds = array<i64: 1, 128>}, {pipeline_mode = #tpu.pipeline_mode<synchronous>, transform_indices = @transform_5, window_bounds = array<i64: 128, 128>}, {pipeline_mode = #tpu.pipeline_mode<synchronous>, transform_indices = @transform_6, window_bounds = array<i64: 1, 128>}, {pipeline_mode = #tpu.pipeline_mode<synchronous>, transform_indices = @transform_7, window_bounds = array<i64: 128, 16>}, {pipeline_mode = #tpu.pipeline_mode<synchronous>, transform_indices = @transform_8, window_bounds = array<i64: 1, 16>}, {pipeline_mode = #tpu.pipeline_mode<synchronous>, transform_indices = @transform_9, window_bounds = array<i64: 8, 128>}, {pipeline_mode = #tpu.pipeline_mode<synchronous>, transform_indices = @transform_10, window_bounds = array<i64: 7, 128>}, {pipeline_mode = #tpu.pipeline_mode<synchronous>, transform_indices = @transform_11, window_bounds = array<i64: 1, 128>}, {pipeline_mode = #tpu.pipeline_mode<synchronous>, transform_indices = @transform_12, window_bounds = array<i64: 128, 128>}, {pipeline_mode = #tpu.pipeline_mode<synchronous>, transform_indices = @transform_13, window_bounds = array<i64: 1, 128>}, {pipeline_mode = #tpu.pipeline_mode<synchronous>, transform_indices = @transform_14, window_bounds = array<i64: 128, 16>}, {pipeline_mode = #tpu.pipeline_mode<synchronous>, transform_indices = @transform_15, window_bounds = array<i64: 1, 16>}, {transform_indices = @transform_16, window_bounds = array<i64: 8, 16>}, {transform_indices = @transform_17, window_bounds = array<i64: 8, 8>}, {transform_indices = @transform_18, window_bounds = array<i64: 8, 8>}, {transform_indices = @transform_19, window_bounds = array<i64: 8, 8>}]} {
    %c0 = arith.constant 0 : index
    %c0_0 = arith.constant 0 : index
    %0 = vector.load %arg1[%c0, %c0_0] : memref<8x16xf32, #tpu.memory_space<vmem>>, vector<8x16xf32>
    %c0_1 = arith.constant 0 : index
    %c0_2 = arith.constant 0 : index
    %1 = vector.load %arg4[%c0_1, %c0_2] : memref<16x128xf32, #tpu.memory_space<vmem>>, vector<16x128xf32>
    %cst = arith.constant dense<0.000000e+00> : vector<8x128xf32>
    %2 = tpu.matmul %0, %1, %cst {dimension_numbers = #tpu.dot_dimension_numbers<[1], [0], [0], [1], [0, 0, 1, 1], [], []>} : vector<8x16xf32>, vector<16x128xf32>, vector<8x128xf32> -> vector<8x128xf32>
    %c0_3 = arith.constant 0 : index
    %c0_4 = arith.constant 0 : index
    %3 = vector.load %arg5[%c0_3, %c0_4] : memref<1x128xf32, #tpu.memory_space<vmem>>, vector<1x128xf32>
    %4 = vector.broadcast %3 : vector<1x128xf32> to vector<8x128xf32>
    %5 = arith.addf %2, %4 : vector<8x128xf32>
    %cst_5 = arith.constant 0.000000e+00 : f32
    %6 = vector.broadcast %cst_5 : f32 to vector<8x128xf32>
    %7 = arith.cmpf ogt, %5, %6 : vector<8x128xf32>
    %cst_6 = arith.constant 1.000000e-01 : f32
    %8 = vector.broadcast %cst_6 : f32 to vector<8x128xf32>
    %9 = arith.mulf %8, %5 : vector<8x128xf32>
    %10 = arith.select %7, %5, %9 : vector<8x128xi1>, vector<8x128xf32>
    %c0_7 = arith.constant 0 : index
    %c0_8 = arith.constant 0 : index
    %11 = vector.load %arg6[%c0_7, %c0_8] : memref<128x128xf32, #tpu.memory_space<vmem>>, vector<128x128xf32>
    %cst_9 = arith.constant dense<0.000000e+00> : vector<8x128xf32>
    %12 = tpu.matmul %10, %11, %cst_9 {dimension_numbers = #tpu.dot_dimension_numbers<[1], [0], [0], [1], [0, 0, 1, 1], [], []>} : vector<8x128xf32>, vector<128x128xf32>, vector<8x128xf32> -> vector<8x128xf32>
    %c0_10 = arith.constant 0 : index
    %c0_11 = arith.constant 0 : index
    %13 = vector.load %arg7[%c0_10, %c0_11] : memref<1x128xf32, #tpu.memory_space<vmem>>, vector<1x128xf32>
    %14 = vector.broadcast %13 : vector<1x128xf32> to vector<8x128xf32>
    %15 = arith.addf %12, %14 : vector<8x128xf32>
    %cst_12 = arith.constant 0.000000e+00 : f32
    %16 = vector.broadcast %cst_12 : f32 to vector<8x128xf32>
    %17 = arith.cmpf ogt, %15, %16 : vector<8x128xf32>
    %cst_13 = arith.constant 1.000000e-01 : f32
    %18 = vector.broadcast %cst_13 : f32 to vector<8x128xf32>
    %19 = arith.mulf %18, %15 : vector<8x128xf32>
    %20 = arith.select %17, %15, %19 : vector<8x128xi1>, vector<8x128xf32>
    %c0_14 = arith.constant 0 : index
    %c0_15 = arith.constant 0 : index
    %21 = vector.load %arg8[%c0_14, %c0_15] : memref<128x16xf32, #tpu.memory_space<vmem>>, vector<128x16xf32>
    %cst_16 = arith.constant dense<0.000000e+00> : vector<8x16xf32>
    %22 = tpu.matmul %20, %21, %cst_16 {dimension_numbers = #tpu.dot_dimension_numbers<[1], [0], [0], [1], [0, 0, 1, 1], [], []>} : vector<8x128xf32>, vector<128x16xf32>, vector<8x16xf32> -> vector<8x16xf32>
    %c0_17 = arith.constant 0 : index
    %c0_18 = arith.constant 0 : index
    %23 = vector.load %arg9[%c0_17, %c0_18] : memref<1x16xf32, #tpu.memory_space<vmem>>, vector<1x16xf32>
    %24 = vector.broadcast %23 : vector<1x16xf32> to vector<8x16xf32>
    %25 = arith.addf %22, %24 : vector<8x16xf32>
    %26 = vector.extract_strided_slice %25 {offsets = [0, 0], sizes = [8, 8], strides = [1, 1]} : vector<8x16xf32> to vector<8x8xf32>
    %27 = vector.extract_strided_slice %25 {offsets = [0, 8], sizes = [8, 8], strides = [1, 1]} : vector<8x16xf32> to vector<8x8xf32>
    %c0_19 = arith.constant 0 : index
    %c0_20 = arith.constant 0 : index
    %28 = vector.load %arg3[%c0_19, %c0_20] : memref<8x8xf32, #tpu.memory_space<vmem>>, vector<8x8xf32>
    %cst_21 = arith.constant 5.000000e-01 : f32
    %29 = vector.broadcast %cst_21 : f32 to vector<8x8xf32>
    %30 = arith.mulf %29, %27 : vector<8x8xf32>
    %31 = math.exp %30 : vector<8x8xf32>
    %32 = arith.mulf %28, %31 : vector<8x8xf32>
    %33 = arith.addf %32, %26 : vector<8x8xf32>
    %c0_22 = arith.constant 0 : index
    %c0_23 = arith.constant 0 : index
    %34 = vector.load %arg18[%c0_22, %c0_23] : memref<8x8xf32, #tpu.memory_space<vmem>>, vector<8x8xf32>
    tpu.vector_store %arg18[%c0_22, %c0_23], %26 {strides = array<i32>} : memref<8x8xf32, #tpu.memory_space<vmem>>, vector<8x8xf32>,
    %c0_24 = arith.constant 0 : index
    %c0_25 = arith.constant 0 : index
    %35 = vector.load %arg19[%c0_24, %c0_25] : memref<8x8xf32, #tpu.memory_space<vmem>>, vector<8x8xf32>
    tpu.vector_store %arg19[%c0_24, %c0_25], %27 {strides = array<i32>} : memref<8x8xf32, #tpu.memory_space<vmem>>, vector<8x8xf32>,
    %c0_26 = arith.constant 0 : index
    %c0_27 = arith.constant 0 : index
    %36 = vector.load %arg20[%c0_26, %c0_27] : memref<8x8xf32, #tpu.memory_space<vmem>>, vector<8x8xf32>
    tpu.vector_store %arg20[%c0_26, %c0_27], %33 {strides = array<i32>} : memref<8x8xf32, #tpu.memory_space<vmem>>, vector<8x8xf32>,
    %c0_28 = arith.constant 0 : index
    %c0_29 = arith.constant 0 : index
    %37 = vector.load %arg10[%c0_28, %c0_29] : memref<8x128xf32, #tpu.memory_space<vmem>>, vector<8x128xf32>
    %cst_30 = arith.constant dense<0.000000e+00> : vector<8x128xf32>
    %38 = tpu.matmul %33, %37, %cst_30 {dimension_numbers = #tpu.dot_dimension_numbers<[1], [0], [0], [1], [0, 0, 1, 1], [], []>} : vector<8x8xf32>, vector<8x128xf32>, vector<8x128xf32> -> vector<8x128xf32>
    %c0_31 = arith.constant 0 : index
    %c0_32 = arith.constant 0 : index
    %39 = vector.load %arg2[%c0_31, %c0_32] : memref<8x7xf32, #tpu.memory_space<vmem>>, vector<8x7xf32>
    %c0_33 = arith.constant 0 : index
    %c0_34 = arith.constant 0 : index
    %40 = vector.load %arg11[%c0_33, %c0_34] : memref<7x128xf32, #tpu.memory_space<vmem>>, vector<7x128xf32>
    %cst_35 = arith.constant dense<0.000000e+00> : vector<8x128xf32>
    %41 = tpu.matmul %39, %40, %cst_35 {dimension_numbers = #tpu.dot_dimension_numbers<[1], [0], [0], [1], [0, 0, 1, 1], [], []>} : vector<8x7xf32>, vector<7x128xf32>, vector<8x128xf32> -> vector<8x128xf32>
    %42 = arith.addf %38, %41 : vector<8x128xf32>
    %c0_36 = arith.constant 0 : index
    %c0_37 = arith.constant 0 : index
    %43 = vector.load %arg12[%c0_36, %c0_37] : memref<1x128xf32, #tpu.memory_space<vmem>>, vector<1x128xf32>
    %44 = vector.broadcast %43 : vector<1x128xf32> to vector<8x128xf32>
    %45 = arith.addf %42, %44 : vector<8x128xf32>
    %cst_38 = arith.constant 0.000000e+00 : f32
    %46 = vector.broadcast %cst_38 : f32 to vector<8x128xf32>
    %47 = arith.cmpf ogt, %45, %46 : vector<8x128xf32>
    %cst_39 = arith.constant 1.000000e-01 : f32
    %48 = vector.broadcast %cst_39 : f32 to vector<8x128xf32>
    %49 = arith.mulf %48, %45 : vector<8x128xf32>
    %50 = arith.select %47, %45, %49 : vector<8x128xi1>, vector<8x128xf32>
    %c0_40 = arith.constant 0 : index
    %c0_41 = arith.constant 0 : index
    %51 = vector.load %arg13[%c0_40, %c0_41] : memref<128x128xf32, #tpu.memory_space<vmem>>, vector<128x128xf32>
    %cst_42 = arith.constant dense<0.000000e+00> : vector<8x128xf32>
    %52 = tpu.matmul %50, %51, %cst_42 {dimension_numbers = #tpu.dot_dimension_numbers<[1], [0], [0], [1], [0, 0, 1, 1], [], []>} : vector<8x128xf32>, vector<128x128xf32>, vector<8x128xf32> -> vector<8x128xf32>
    %c0_43 = arith.constant 0 : index
    %c0_44 = arith.constant 0 : index
    %53 = vector.load %arg14[%c0_43, %c0_44] : memref<1x128xf32, #tpu.memory_space<vmem>>, vector<1x128xf32>
    %54 = vector.broadcast %53 : vector<1x128xf32> to vector<8x128xf32>
    %55 = arith.addf %52, %54 : vector<8x128xf32>
    %cst_45 = arith.constant 0.000000e+00 : f32
    %56 = vector.broadcast %cst_45 : f32 to vector<8x128xf32>
    %57 = arith.cmpf ogt, %55, %56 : vector<8x128xf32>
    %cst_46 = arith.constant 1.000000e-01 : f32
    %58 = vector.broadcast %cst_46 : f32 to vector<8x128xf32>
    %59 = arith.mulf %58, %55 : vector<8x128xf32>
    %60 = arith.select %57, %55, %59 : vector<8x128xi1>, vector<8x128xf32>
    %c0_47 = arith.constant 0 : index
    %c0_48 = arith.constant 0 : index
    %61 = vector.load %arg15[%c0_47, %c0_48] : memref<128x16xf32, #tpu.memory_space<vmem>>, vector<128x16xf32>
    %cst_49 = arith.constant dense<0.000000e+00> : vector<8x16xf32>
    %62 = tpu.matmul %60, %61, %cst_49 {dimension_numbers = #tpu.dot_dimension_numbers<[1], [0], [0], [1], [0, 0, 1, 1], [], []>} : vector<8x128xf32>, vector<128x16xf32>, vector<8x16xf32> -> vector<8x16xf32>
    %c0_50 = arith.constant 0 : index
    %c0_51 = arith.constant 0 : index
    %63 = vector.load %arg16[%c0_50, %c0_51] : memref<1x16xf32, #tpu.memory_space<vmem>>, vector<1x16xf32>
    %64 = vector.broadcast %63 : vector<1x16xf32> to vector<8x16xf32>
    %65 = arith.addf %62, %64 : vector<8x16xf32>
    %c0_52 = arith.constant 0 : index
    %c0_53 = arith.constant 0 : index
    %66 = vector.load %arg17[%c0_52, %c0_53] : memref<8x16xf32, #tpu.memory_space<vmem>>, vector<8x16xf32>
    tpu.vector_store %arg17[%c0_52, %c0_53], %65 {strides = array<i32>} : memref<8x16xf32, #tpu.memory_space<vmem>>, vector<8x16xf32>,
    return
  }
  func.func @transform_0(%arg0: i32) -> (i32, i32) {
    %c0_i32 = arith.constant 0 : i32
    %c0_i32_0 = arith.constant 0 : i32
    return %arg0, %c0_i32 : i32, i32
  }
  func.func @transform_1(%arg0: i32) -> (i32, i32) {
    %c0_i32 = arith.constant 0 : i32
    %c0_i32_0 = arith.constant 0 : i32
    return %arg0, %c0_i32 : i32, i32
  }
  func.func @transform_2(%arg0: i32) -> (i32, i32) {
    %c0_i32 = arith.constant 0 : i32
    %c0_i32_0 = arith.constant 0 : i32
    return %arg0, %c0_i32 : i32, i32
  }
  func.func @transform_3(%arg0: i32) -> (i32, i32) {
    %c0_i32 = arith.constant 0 : i32
    %c0_i32_0 = arith.constant 0 : i32
    %c0_i32_1 = arith.constant 0 : i32
    return %c0_i32, %c0_i32_0 : i32, i32
  }
  func.func @transform_4(%arg0: i32) -> (i32, i32) {
    %c0_i32 = arith.constant 0 : i32
    %c0_i32_0 = arith.constant 0 : i32
    %c0_i32_1 = arith.constant 0 : i32
    return %c0_i32, %c0_i32_0 : i32, i32
  }
  func.func @transform_5(%arg0: i32) -> (i32, i32) {
    %c0_i32 = arith.constant 0 : i32
    %c0_i32_0 = arith.constant 0 : i32
    %c0_i32_1 = arith.constant 0 : i32
    return %c0_i32, %c0_i32_0 : i32, i32
  }
  func.func @transform_6(%arg0: i32) -> (i32, i32) {
    %c0_i32 = arith.constant 0 : i32
    %c0_i32_0 = arith.constant 0 : i32
    %c0_i32_1 = arith.constant 0 : i32
    return %c0_i32, %c0_i32_0 : i32, i32
  }
  func.func @transform_7(%arg0: i32) -> (i32, i32) {
    %c0_i32 = arith.constant 0 : i32
    %c0_i32_0 = arith.constant 0 : i32
    %c0_i32_1 = arith.constant 0 : i32
    return %c0_i32, %c0_i32_0 : i32, i32
  }
  func.func @transform_8(%arg0: i32) -> (i32, i32) {
    %c0_i32 = arith.constant 0 : i32
    %c0_i32_0 = arith.constant 0 : i32
    %c0_i32_1 = arith.constant 0 : i32
    return %c0_i32, %c0_i32_0 : i32, i32
  }
  func.func @transform_9(%arg0: i32) -> (i32, i32) {
    %c0_i32 = arith.constant 0 : i32
    %c0_i32_0 = arith.constant 0 : i32
    %c0_i32_1 = arith.constant 0 : i32
    return %c0_i32, %c0_i32_0 : i32, i32
  }
  func.func @transform_10(%arg0: i32) -> (i32, i32) {
    %c0_i32 = arith.constant 0 : i32
    %c0_i32_0 = arith.constant 0 : i32
    %c0_i32_1 = arith.constant 0 : i32
    return %c0_i32, %c0_i32_0 : i32, i32
  }
  func.func @transform_11(%arg0: i32) -> (i32, i32) {
    %c0_i32 = arith.constant 0 : i32
    %c0_i32_0 = arith.constant 0 : i32
    %c0_i32_1 = arith.constant 0 : i32
    return %c0_i32, %c0_i32_0 : i32, i32
  }
  func.func @transform_12(%arg0: i32) -> (i32, i32) {
    %c0_i32 = arith.constant 0 : i32
    %c0_i32_0 = arith.constant 0 : i32
    %c0_i32_1 = arith.constant 0 : i32
    return %c0_i32, %c0_i32_0 : i32, i32
  }
  func.func @transform_13(%arg0: i32) -> (i32, i32) {
    %c0_i32 = arith.constant 0 : i32
    %c0_i32_0 = arith.constant 0 : i32
    %c0_i32_1 = arith.constant 0 : i32
    return %c0_i32, %c0_i32_0 : i32, i32
  }
  func.func @transform_14(%arg0: i32) -> (i32, i32) {
    %c0_i32 = arith.constant 0 : i32
    %c0_i32_0 = arith.constant 0 : i32
    %c0_i32_1 = arith.constant 0 : i32
    return %c0_i32, %c0_i32_0 : i32, i32
  }
  func.func @transform_15(%arg0: i32) -> (i32, i32) {
    %c0_i32 = arith.constant 0 : i32
    %c0_i32_0 = arith.constant 0 : i32
    %c0_i32_1 = arith.constant 0 : i32
    return %c0_i32, %c0_i32_0 : i32, i32
  }
  func.func @transform_16(%arg0: i32) -> (i32, i32) {
    %c0_i32 = arith.constant 0 : i32
    %c0_i32_0 = arith.constant 0 : i32
    return %arg0, %c0_i32 : i32, i32
  }
  func.func @transform_17(%arg0: i32) -> (i32, i32) {
    %c0_i32 = arith.constant 0 : i32
    %c0_i32_0 = arith.constant 0 : i32
    return %arg0, %c0_i32 : i32, i32
  }
  func.func @transform_18(%arg0: i32) -> (i32, i32) {
    %c0_i32 = arith.constant 0 : i32
    %c0_i32_0 = arith.constant 0 : i32
    return %arg0, %c0_i32 : i32, i32
  }
  func.func @transform_19(%arg0: i32) -> (i32, i32) {
    %c0_i32 = arith.constant 0 : i32
    %c0_i32_0 = arith.constant 0 : i32
    return %arg0, %c0_i32 : i32, i32
  }
}

</mosaic_0001>

<bundles_post_ra>
// kernel: tpu_custom_call.1
= control target key start
LH: loop header
LB: loop body
LE: loop exit
PB: predicated region body
PF: predicated region fallthrough
CT: control target
= control target key end

     0   :  { %s1716_s0 = inlined_call_operand.hbm [shape: f32[8,16], index: 0, kind: input, shape index: {}]   ;;  %s1717_s1 = inlined_call_operand.hbm [shape: f32[8,7], index: 1, kind: input, shape index: {}]   ;;  %s1718_s2 = inlined_call_operand.hbm [shape: f32[8,8], index: 2, kind: input, shape index: {}]   ;;  %s1719_s3 = inlined_call_operand.vmem [shape: f32[16,128], index: 3, kind: input, shape index: {}]   ;;  %s1720_s4 = inlined_call_operand.vmem [shape: f32[1,128], index: 4, kind: input, shape index: {}]   ;;  %s1721_s5 = inlined_call_operand.vmem [shape: f32[128,128], index: 5, kind: input, shape index: {}]   ;;  %s1722_s6 = inlined_call_operand.vmem [shape: f32[1,128], index: 6, kind: input, shape index: {}]   ;;  %s1723_s7 = inlined_call_operand.vmem [shape: f32[128,16], index: 7, kind: input, shape index: {}]   ;;  %s1724_s8 = inlined_call_operand.hbm [shape: f32[1,16], index: 8, kind: input, shape index: {}]   ;;  %s1725_s9 = inlined_call_operand.vmem [shape: f32[8,128], index: 9, kind: input, shape index: {}]   ;;  %s1726_s10 = inlined_call_operand.vmem [shape: f32[7,128], index: 10, kind: input, shape index: {}]   ;;  %s1727_s11 = inlined_call_operand.hbm [shape: f32[1,128], index: 11, kind: input, shape index: {}]   ;;  %s1728_s12 = inlined_call_operand.vmem [shape: f32[128,128], index: 12, kind: input, shape index: {}]   ;;  %s1729_s13 = inlined_call_operand.vmem [shape: f32[1,128], index: 13, kind: input, shape index: {}]   ;;  %s1730_s14 = inlined_call_operand.vmem [shape: f32[128,16], index: 14, kind: input, shape index: {}]   ;;  %s1731_s15 = inlined_call_operand.vmem [shape: f32[1,16], index: 15, kind: input, shape index: {}]   ;;  %s1732_s16 = inlined_call_operand.hbm [shape: f32[8,16], index: 16, kind: output, shape index: {0}]   ;;  %s1733_s17 = inlined_call_operand.hbm [shape: f32[8,8], index: 17, kind: output, shape index: {1}]   ;;  %s1734_s18 = inlined_call_operand.hbm [shape: f32[8,8], index: 18, kind: output, shape index: {2}]   ;;  %s1735_s19 = inlined_call_operand.hbm [shape: f32[8,8], index: 19, kind: output, shape index: {3}]  }
   0x1   :  { %1737 = sst [smem:[#allocation23_spill]] %s1716_s0 }
   0x2   :  { %1738 = sst [smem:[#allocation24_spill]] %s1717_s1 }
   0x3   :  { %1739 = sst [smem:[#allocation25_spill]] %s1718_s2 }
   0x4   :  { %1740 = sst [smem:[#allocation26_spill]] %s1719_s3 }
   0x5   :  { %25 = vsyncpa [#allocation3], 0 }
   0x6   :  { %26 = vsyncpa [#allocation6], 0 }
   0x7   :  { %27 = vsyncpa [#allocation9], 0 }
   0x8   :  { %28 = vsyncpa [#allocation4], 0 }
   0x9   :  { %29 = vsyncpa [#allocation13], 0 }
   0xa   :  { %30 = vsyncpa [#allocation16], 0  ;;  %s1273_s0 = smov [#allocation5]   ;;  %s1274_s20 = smov [#allocation8]  }
   0xb   :  { %s47_s30 = sshll.u32 %s1273_s0, 4  ;;  %s77_s21 = sshll.u32 %s1274_s20, 4  ;;  %s48_s30 = int_to_ptr.vmem [resolvable:$true] %s47_s30  ;;  %s78_s21 = int_to_ptr.vmem [resolvable:$true] %s77_s21 }
   0xc   :  { %s1089_s1 = scalar_lea.vmem %s48_s30, 128  ;;  %p1094_p1 = scmp.lt.s32.totalorder %s48_s30, %s48_s30 }
   0xd   :  { %p1090_p0 = scmp.ne.s32.totalorder %s48_s30, %s1089_s1  ;;  %p1095_p2 = scmp.lt.s32.totalorder %s1089_s1, %s1089_s1 }
   0xf   :  { %p1096_p3 = por %p1095_p2, %p1094_p1 }
  0x11   :  { %p1097_p4 = pnand %p1096_p3, %p1090_p0 }
  0x13   :  { %1100 = shalt.err (!%p1097_p4)
}
  0x14   :  { %s1741_s23 = sld [smem:[#allocation24_spill]]  ;;  %s1109_s24 = scalar_lea.vmem %s78_s21, 16 }
  0x15   :  { %p1110_p5 = scmp.ne.s32.totalorder %s78_s21, %s1109_s24  ;;  %s1113_s25 = scalar_lea.vmem %s78_s21, 32 }
  0x16   :  { %p1114_p6 = scmp.lt.s32.totalorder %s78_s21, %s78_s21  ;;  %p1115_p7 = scmp.lt.s32.totalorder %s1113_s25, %s1109_s24 }
  0x18   :  { %p1116_p8 = por %p1115_p7, %p1114_p6 }
  0x1a   :  { %50 = dma.hbm_to_vmem [thread:$0]  %s1741_s23, 128, %s48_s30, [#allocation6]  }
  0x1b   :  { %p1117_p9 = pnand %p1116_p8, %p1110_p5 }
  0x1d   :  { %1120 = shalt.err (!%p1117_p9)
}
  0x1e   :  { %80 = dma.hbm_to_vmem [thread:$0]  %s1724_s8, 16, %s78_s21, [#allocation9]  }
  0x1f   :  { %s1275_s27 = smov [#allocation2]   ;;  %s1276_s29 = smov [#allocation7]  }
  0x20   :  { %s37_s28 = sshll.u32 %s1275_s27, 4  ;;  %s57_s0 = sshll.u32 %s1276_s29, 4  ;;  %s38_s28 = int_to_ptr.vmem [resolvable:$true] %s37_s28  ;;  %s58_s0 = int_to_ptr.vmem [resolvable:$true] %s57_s0 }
  0x21   :  { %s1129_s20 = scalar_lea.vmem %s38_s28, 128  ;;  %p1134_p11 = scmp.lt.s32.totalorder %s38_s28, %s38_s28 }
  0x22   :  { %p1130_p10 = scmp.ne.s32.totalorder %s38_s28, %s1129_s20  ;;  %p1135_p12 = scmp.lt.s32.totalorder %s1129_s20, %s1129_s20 }
  0x24   :  { %p1136_p13 = por %p1135_p12, %p1134_p11 }
  0x26   :  { %p1137_p0 = pnand %p1136_p13, %p1130_p10 }
  0x28   :  { %1140 = shalt.err (!%p1137_p0)
}
  0x29   :  { %s1742_s22 = sld [smem:[#allocation23_spill]]  ;;  %s1149_s2 = scalar_lea.vmem %s58_s0, 128 }
  0x2a   :  { %p1150_p1 = scmp.ne.s32.totalorder %s58_s0, %s1149_s2  ;;  %p1154_p2 = scmp.lt.s32.totalorder %s58_s0, %s58_s0 }
  0x2b   :  { %p1155_p3 = scmp.lt.s32.totalorder %s1149_s2, %s1149_s2 }
  0x2d   :  { %p1156_p4 = por %p1155_p3, %p1154_p2 }
  0x2f   :  { %40 = dma.hbm_to_vmem [thread:$0]  %s1742_s22, 128, %s38_s28, [#allocation3]  }
  0x30   :  { %p1157_p5 = pnand %p1156_p4, %p1150_p1 }
  0x32   :  { %1160 = shalt.err (!%p1157_p5)
}
  0x33   :  { %s1743_s23 = sld [smem:[#allocation25_spill]]  ;;  %s1277_s24 = smov [#allocation10]  }
  0x34   :  { %s91_s25 = sshll.u32 %s1277_s24, 4  ;;  %s92_s25 = int_to_ptr.vmem [resolvable:$true] %s91_s25 }
  0x35   :  { %s1169_s3 = scalar_lea.vmem %s92_s25, 16  ;;  %s1173_s26 = scalar_lea.vmem %s92_s25, 32 }
  0x36   :  { %p1170_p6 = scmp.ne.s32.totalorder %s92_s25, %s1169_s3  ;;  %p1174_p7 = scmp.lt.s32.totalorder %s92_s25, %s92_s25 }
  0x37   :  { %p1175_p8 = scmp.lt.s32.totalorder %s1173_s26, %s1169_s3 }
  0x39   :  { %60 = dma.hbm_to_vmem [thread:$0]  %s1743_s23, 128, %s58_s0, [#allocation6]  }
  0x3a   :  { %p1176_p9 = por %p1175_p8, %p1174_p7 }
  0x3c   :  { %p1177_p10 = pnand %p1176_p9, %p1170_p6 }
  0x3e   :  { %1180 = shalt.err (!%p1177_p10)
}
  0x3f   :  { %94 = dma.hbm_to_vmem [thread:$0]  %s1727_s11, 16, %s92_s25, [#allocation9]  }
  0x40   :  { %1261 = dma.done.wait [#allocation3], 128  }
  0x41   :  { %1262 = vsyncadd [#allocation3], 4294967168 }
  0x42   :  { %1263 = dma.done.wait [#allocation6], 256  }
  0x43   :  { %1264 = vsyncadd [#allocation6], 4294967040 }
  0x44   :  { %1265 = dma.done.wait [#allocation9], 32  }
  0x45   :  { %1266 = vsyncadd [#allocation9], 4294967264  ;;  %v1278_v0 = vmov 0.0   ;;  %vm1279_vm0 = vmmov 0   ;;  %s1744_s0 = sld [smem:[#allocation26_spill]]  ;;  %v118_v3 = vld [vmem:[#allocation2] sm:$0xff] }
  0x46   :  { %910 = vmatprep.subr.mxu0 %v1278_v0  ;;  %914 = vmatprep.mubr.msk.f32.mxu0 %vm1279_vm0, %v1278_v0  ;;  %vm128_vm1 = vcmask 130048   ;;  %v220_v4 = vld [vmem:[%s1721_s5 + $0x78] sm:$0xff]  ;;  %v219_v5 = vld [vmem:[%s1721_s5 + $0x70] sm:$0xff]  ;;  %v218_v6 = vld [vmem:[%s1721_s5 + $0x68] sm:$0xff]  ;;  %vm404_vm4 = vcmask 64512   ;;  %vm419_vm5 = vcmask 1046528  }
  0x47   :  { %917 = vmatprep.subr.mxu1 %v1278_v0  ;;  %949 = vmatprep.mubr.msk.f32.mxu1 %vm1279_vm0, %v1278_v0  ;;  %v217_v7 = vld [vmem:[%s1721_s5 + $0x60] sm:$0xff]  ;;  %v216_v8 = vld [vmem:[%s1721_s5 + $0x58] sm:$0xff]  ;;  %v215_v9 = vld [vmem:[%s1721_s5 + $0x50] sm:$0xff]  ;;  %vm415_vm6 = vcmask 56320   ;;  %s1280_s3 = smov 120  }
  0x48   :  { %918 = vmatpush3.msra.mxu1 %v220_v4  ;;  %v214_v10 = vld [vmem:[%s1721_s5 + $0x48] sm:$0xff]  ;;  %v213_v11 = vld [vmem:[%s1721_s5 + $0x40] sm:$0xff]  ;;  %v212_v12 = vld [vmem:[%s1721_s5 + $0x38] sm:$0xff] }
  0x49   :  { %919 = vmatprep.subr.mxu1 %v1278_v0  ;;  %v211_v13 = vld [vmem:[%s1721_s5 + $0x30] sm:$0xff]  ;;  %v210_v14 = vld [vmem:[%s1721_s5 + $0x28] sm:$0xff]  ;;  %v209_v15 = vld [vmem:[%s1721_s5 + $0x20] sm:$0xff] }
  0x4a   :  { %920 = vmatpush3.msra.mxu1 %v219_v5  ;;  %v208_v16 = vld [vmem:[%s1721_s5 + $0x18] sm:$0xff]  ;;  %v207_v17 = vld [vmem:[%s1721_s5 + $0x10] sm:$0xff]  ;;  %v206_v18 = vld [vmem:[%s1721_s5 + $0x8] sm:$0xff] }
  0x4b   :  { %v120_v1 = vld [vmem:[%s1744_s0 + $0x8] sm:$0xff]  ;;  %v119_v2 = vld [vmem:[%s1744_s0] sm:$0xff]  ;;  %921 = vmatprep.subr.mxu1 %v1278_v0  ;;  %v316_v20 = vld [vmem:[%s1723_s7 + $0x78] sm:$0xff] }
  0x4c   :  { %911 = vmatpush3.msra.mxu0 %v120_v1  ;;  %922 = vmatpush3.msra.mxu1 %v218_v6  ;;  %v205_v19 = vld [vmem:[%s1721_s5] sm:$0xff]  ;;  %v315_v21 = vld [vmem:[%s1723_s7 + $0x70] sm:$0xff]  ;;  %v314_v22 = vld [vmem:[%s1723_s7 + $0x68] sm:$0xff] }
  0x4d   :  { %912 = vmatprep.subr.mxu0 %v1278_v0  ;;  %923 = vmatprep.subr.mxu1 %v1278_v0  ;;  %v313_v23 = vld [vmem:[%s1723_s7 + $0x60] sm:$0xff]  ;;  %v312_v24 = vld [vmem:[%s1723_s7 + $0x58] sm:$0xff]  ;;  %v311_v25 = vld [vmem:[%s1723_s7 + $0x50] sm:$0xff] }
  0x4e   :  { %913 = vmatpush3.msra.mxu0 %v119_v2  ;;  %924 = vmatpush3.msra.mxu1 %v217_v7  ;;  %v310_v26 = vld [vmem:[%s1723_s7 + $0x48] sm:$0xff]  ;;  %v309_v27 = vld [vmem:[%s1723_s7 + $0x40] sm:$0xff]  ;;  %v308_v28 = vld [vmem:[%s1723_s7 + $0x38] sm:$0xff] }
  0x4f   :  { %915 = vmatmul.mubr.msk.f32.vlgmr.msra.gmra.mxu0 %vm128_vm1, %v118_v3  ;;  %952 = vmatprep.subr.mxu0 %v1278_v0  ;;  %v307_v29 = vld [vmem:[%s1723_s7 + $0x30] sm:$0xff]  ;;  %v306_v30 = vld [vmem:[%s1723_s7 + $0x28] sm:$0xff]  ;;  %v305_v31 = vld [vmem:[%s1723_s7 + $0x20] sm:$0xff] }
  0x50   :  { %984 = vmatprep.mubr.msk.f32.mxu0 %vm1279_vm0, %v1278_v0  ;;  %925 = vmatprep.subr.mxu1 %v1278_v0  ;;  %v304_v32 = vld [vmem:[%s1723_s7 + $0x18] sm:$0xff]  ;;  %v825_v33 = vld [vmem:[%s1720_s4] ss:$0 sm:$0xff]  ;;  %v303_v39 = vld [vmem:[%s1723_s7 + $0x10] sm:$0xff] }
  0x51   :  { %926 = vmatpush3.msra.mxu1 %v216_v8  ;;  %953 = vmatpush3.msra.mxu0 %v316_v20  ;;  %v302_v40 = vld [vmem:[%s1723_s7 + $0x8] sm:$0xff]  ;;  %v301_v41 = vld [vmem:[%s1723_s7] sm:$0xff]  ;;  %v828_v48 = vld [vmem:[#allocation8] ss:$0 sm:$0xff] }
  0x52   :  { %927 = vmatprep.subr.mxu1 %v1278_v0  ;;  %954 = vmatprep.subr.mxu0 %v1278_v0  ;;  %v827_v42 = vld [vmem:[%s1722_s6] ss:$0 sm:$0xff]  ;;  %v413_v55 = vld [vmem:[#allocation5] sm:$0xff]  ;;  %v592_v57 = vld [vmem:[%s1728_s12 + $0x78] sm:$0xff]  ;;  %s1281_s6 = smov [#allocation12]  }
  0x53   :  { %928 = vmatpush3.msra.mxu1 %v215_v9  ;;  %955 = vmatpush3.msra.mxu0 %v315_v21  ;;  %v414_v54 = vld [vmem:[%s1726_s10] sm:$0x7f]  ;;  %v591_v58 = vld [vmem:[%s1728_s12 + $0x70] sm:$0xff]  ;;  %v590_v59 = vld [vmem:[%s1728_s12 + $0x68] sm:$0xff]  ;;  %s783_s7 = sshll.u32 %s1281_s6, 4  ;;  %s784_s7 = int_to_ptr.vmem [resolvable:$true] %s783_s7 }
  0x54   :  { %929 = vmatprep.subr.mxu1 %v1278_v0  ;;  %956 = vmatprep.subr.mxu0 %v1278_v0  ;;  %v412_v56 = vld [vmem:[%s1725_s9] sm:$0xff]  ;;  %v588_v61 = vld [vmem:[%s1728_s12 + $0x58] sm:$0xff]  ;;  %v587_v63 = vld [vmem:[%s1728_s12 + $0x50] sm:$0xff]  ;;  %s1181_s0 = scalar_lea.vmem %s784_s7, 128  ;;  %p1186_p12 = scmp.lt.s32.totalorder %s784_s7, %s784_s7 }
  0x55   :  { %930 = vmatpush3.msra.mxu1 %v214_v10  ;;  %957 = vmatpush3.msra.mxu0 %v314_v22  ;;  %v589_v60 = vld [vmem:[%s1728_s12 + $0x60] sm:$0xff]  ;;  %v586_v1 = vld [vmem:[%s1728_s12 + $0x48] sm:$0xff]  ;;  %v584_v3 = vld [vmem:[%s1728_s12 + $0x38] sm:$0xff]  ;;  %p1182_p11 = scmp.ne.s32.totalorder %s784_s7, %s1181_s0  ;;  %p1187_p13 = scmp.lt.s32.totalorder %s1181_s0, %s1181_s0 }
  0x56   :  { %931 = vmatprep.subr.mxu1 %v1278_v0  ;;  %958 = vmatprep.subr.mxu0 %v1278_v0  ;;  %v585_v2 = vld [vmem:[%s1728_s12 + $0x40] sm:$0xff]  ;;  %v583_v4 = vld [vmem:[%s1728_s12 + $0x30] sm:$0xff]  ;;  %v582_v5 = vld [vmem:[%s1728_s12 + $0x28] sm:$0xff] }
  0x57   :  { %932 = vmatpush3.msra.mxu1 %v213_v11  ;;  %959 = vmatpush3.msra.mxu0 %v313_v23  ;;  %v581_v6 = vld [vmem:[%s1728_s12 + $0x20] sm:$0xff]  ;;  %v394_v7 = vld [vmem:[#allocation7] sm:$0xff]  ;;  %v686_v20 = vld [vmem:[%s1730_s14 + $0x68] sm:$0xff]  ;;  %p1188_p0 = por %p1187_p13, %p1186_p12 }
  0x58   :  { %933 = vmatprep.subr.mxu1 %v1278_v0  ;;  %960 = vmatprep.subr.mxu0 %v1278_v0  ;;  %v685_v21 = vld [vmem:[%s1730_s14 + $0x60] sm:$0xff]  ;;  %v684_v22 = vld [vmem:[%s1730_s14 + $0x58] sm:$0xff]  ;;  %v683_v23 = vld [vmem:[%s1730_s14 + $0x50] sm:$0xff] }
  0x59   :  { %934 = vmatpush3.msra.mxu1 %v212_v12  ;;  %961 = vmatpush3.msra.mxu0 %v312_v24  ;;  %v682_v24 = vld [vmem:[%s1730_s14 + $0x48] sm:$0xff]  ;;  %p1189_p1 = pnand %p1188_p0, %p1182_p11 }
  0x5a   :  { %935 = vmatprep.subr.mxu1 %v1278_v0  ;;  %962 = vmatprep.subr.mxu0 %v1278_v0 }
  0x5b   :  { %936 = vmatpush3.msra.mxu1 %v211_v13  ;;  %963 = vmatpush3.msra.mxu0 %v311_v25  ;;  %v681_v25 = vld [vmem:[%s1730_s14 + $0x40] sm:$0xff] }
  0x5c   :  { %937 = vmatprep.subr.mxu1 %v1278_v0  ;;  %964 = vmatprep.subr.mxu0 %v1278_v0 }
  0x5d   :  { %938 = vmatpush3.msra.mxu1 %v210_v14  ;;  %965 = vmatpush3.msra.mxu0 %v310_v26  ;;  %v580_v14 = vld [vmem:[%s1728_s12 + $0x18] sm:$0xff] }
  0x5e   :  { %939 = vmatprep.subr.mxu1 %v1278_v0  ;;  %966 = vmatprep.subr.mxu0 %v1278_v0  ;;  %v680_v26 = vld [vmem:[%s1730_s14 + $0x38] sm:$0xff] }
  0x5f   :  { %940 = vmatpush3.msra.mxu1 %v209_v15  ;;  %967 = vmatpush3.msra.mxu0 %v309_v27  ;;  %v579_v15 = vld [vmem:[%s1728_s12 + $0x10] sm:$0xff] }
  0x60   :  { %941 = vmatprep.subr.mxu1 %v1278_v0  ;;  %968 = vmatprep.subr.mxu0 %v1278_v0  ;;  %v679_v27 = vld [vmem:[%s1730_s14 + $0x30] sm:$0xff] }
  0x61   :  { %942 = vmatpush3.msra.mxu1 %v208_v16  ;;  %969 = vmatpush3.msra.mxu0 %v308_v28  ;;  %v578_v16 = vld [vmem:[%s1728_s12 + $0x8] sm:$0xff] }
  0x62   :  { %943 = vmatprep.subr.mxu1 %v1278_v0  ;;  %970 = vmatprep.subr.mxu0 %v1278_v0  ;;  %v678_v28 = vld [vmem:[%s1730_s14 + $0x28] sm:$0xff] }
  0x63   :  { %944 = vmatpush3.msra.mxu1 %v207_v17  ;;  %971 = vmatpush3.msra.mxu0 %v307_v29  ;;  %v577_v17 = vld [vmem:[%s1728_s12] sm:$0xff] }
  0x64   :  { %945 = vmatprep.subr.mxu1 %v1278_v0  ;;  %972 = vmatprep.subr.mxu0 %v1278_v0  ;;  %v677_v29 = vld [vmem:[%s1730_s14 + $0x20] sm:$0xff] }
  0x65   :  { %946 = vmatpush3.msra.mxu1 %v206_v18  ;;  %973 = vmatpush3.msra.mxu0 %v306_v30  ;;  %v688_v18 = vld [vmem:[%s1730_s14 + $0x78] sm:$0xff] }
  0x66   :  { %947 = vmatprep.subr.mxu1 %v1278_v0  ;;  %974 = vmatprep.subr.mxu0 %v1278_v0  ;;  %v676_v30 = vld [vmem:[%s1730_s14 + $0x18] sm:$0xff] }
  0x67   :  { %948 = vmatpush3.msra.mxu1 %v205_v19  ;;  %975 = vmatpush3.msra.mxu0 %v305_v31  ;;  %v687_v19 = vld [vmem:[%s1730_s14 + $0x70] sm:$0xff] }
  0x68   :  { %987 = vmatprep.subr.mxu1 %v1278_v0  ;;  %976 = vmatprep.subr.mxu0 %v1278_v0 }
  0x69   :  { %977 = vmatpush3.msra.mxu0 %v304_v32  ;;  %v832_v32 = vld [vmem:[#allocation10] ss:$0 sm:$0xff] }
  0x6a   :  { %978 = vmatprep.subr.mxu0 %v1278_v0 }
  0x6b   :  { %979 = vmatpush3.msra.mxu0 %v303_v39  ;;  %v674_v39 = vld [vmem:[%s1730_s14 + $0x8] sm:$0xff] }
  0x6c   :  { %980 = vmatprep.subr.mxu0 %v1278_v0 }
  0x6d   :  { %981 = vmatpush3.msra.mxu0 %v302_v40  ;;  %v673_v40 = vld [vmem:[%s1730_s14] sm:$0xff] }
  0x6e   :  { %982 = vmatprep.subr.mxu0 %v1278_v0 }
  0x6f   :  { %983 = vmatpush3.msra.mxu0 %v301_v41  ;;  %v833_v41 = vld [vmem:[%s1729_s13] ss:$0 sm:$0xff] }
  0x70   :  { %992 = vmatprep.subr.mxu0 %v1278_v0 }
 0x10f   :  { %v198_v34 = vpop.f32.mrf.mxu0 }
 0x110   :  { %v199_v35 = vadd.f32 %v825_v33, %v198_v34 }
 0x111   :  { %v916_v36 = vpop.f32.mrf.mxu0 }
 0x112   :  { %v203_v37 = vmul.f32 0.1, %v199_v35  ;;  %vm202_vm2 = vcmp.gt.f32.partialorder %v199_v35, 0.0 }
 0x114   :  { %v204_v38 = vsel %vm202_vm2, %v199_v35, %v203_v37 }
 0x115   :  { %950 = vmatmul.mubr.f32.vlgmr.msra.gmra.mxu1 %v204_v38  ;;  %v675_v38 = vld [vmem:[%s1730_s14 + $0x10] sm:$0xff] }
 0x116   :  { %989 = vmatprep.mubr.msk.f32.mxu1 %vm1279_vm0, %v1278_v0  ;;  %988 = vmatpush3.msk.msra.mxu1 %vm419_vm5, %v414_v54 }
 0x117   :  { %997 = vmatprep.subr.mxu1 %v1278_v0 }
 0x119   :  { %990 = vmatmul.mubr.msk.f32.vlgmr.msra.gmra.mxu1 %vm415_vm6, %v413_v55 }
 0x11a   :  { %1029 = vmatprep.mubr.msk.f32.mxu1 %vm1279_vm0, %v1278_v0  ;;  %998 = vmatpush3.msra.mxu1 %v592_v57 }
 0x11b   :  { %999 = vmatprep.subr.mxu1 %v1278_v0 }
 0x11c   :  { %1000 = vmatpush3.msra.mxu1 %v591_v58 }
 0x11d   :  { %1001 = vmatprep.subr.mxu1 %v1278_v0 }
 0x11e   :  { %1002 = vmatpush3.msra.mxu1 %v590_v59 }
 0x11f   :  { %1003 = vmatprep.subr.mxu1 %v1278_v0 }
 0x120   :  { %1004 = vmatpush3.msra.mxu1 %v589_v60 }
 0x121   :  { %1005 = vmatprep.subr.mxu1 %v1278_v0 }
 0x122   :  { %1006 = vmatpush3.msra.mxu1 %v588_v61 }
 0x123   :  { %1007 = vmatprep.subr.mxu1 %v1278_v0 }
 0x124   :  { %1008 = vmatpush3.msra.mxu1 %v587_v63 }
 0x125   :  { %1009 = vmatprep.subr.mxu1 %v1278_v0 }
 0x126   :  { %1010 = vmatpush3.msra.mxu1 %v586_v1 }
 0x127   :  { %1011 = vmatprep.subr.mxu1 %v1278_v0 }
 0x128   :  { %1012 = vmatpush3.msra.mxu1 %v585_v2 }
 0x129   :  { %1013 = vmatprep.subr.mxu1 %v1278_v0 }
 0x12a   :  { %1014 = vmatpush3.msra.mxu1 %v584_v3 }
 0x12b   :  { %1015 = vmatprep.subr.mxu1 %v1278_v0 }
 0x12c   :  { %1016 = vmatpush3.msra.mxu1 %v583_v4 }
 0x12d   :  { %1017 = vmatprep.subr.mxu1 %v1278_v0 }
 0x12e   :  { %1018 = vmatpush3.msra.mxu1 %v582_v5 }
 0x12f   :  { %1019 = vmatprep.subr.mxu1 %v1278_v0 }
 0x130   :  { %1020 = vmatpush3.msra.mxu1 %v581_v6 }
 0x131   :  { %1021 = vmatprep.subr.mxu1 %v1278_v0 }
 0x132   :  { %1022 = vmatpush3.msra.mxu1 %v580_v14 }
 0x133   :  { %1023 = vmatprep.subr.mxu1 %v1278_v0 }
 0x134   :  { %1024 = vmatpush3.msra.mxu1 %v579_v15 }
 0x135   :  { %1025 = vmatprep.subr.mxu1 %v1278_v0 }
 0x136   :  { %1026 = vmatpush3.msra.mxu1 %v578_v16 }
 0x137   :  { %1027 = vmatprep.subr.mxu1 %v1278_v0 }
 0x138   :  { %1028 = vmatpush3.msra.mxu1 %v577_v17 }
 0x1d5   :  { %v294_v43 = vpop.f32.mrf.mxu1 }
 0x1d6   :  { %v295_v44 = vadd.f32 %v827_v42, %v294_v43 }
 0x1d7   :  { %v951_v45 = vpop.f32.mrf.mxu1 }
 0x1d8   :  { %vm298_vm3 = vcmp.gt.f32.partialorder %v295_v44, 0.0  ;;  %v299_v46 = vmul.f32 0.1, %v295_v44 }
 0x1d9   :  { %v489_v12 = vpop.f32.mrf.mxu1 }
 0x1da   :  { %v300_v47 = vsel %vm298_vm3, %v295_v44, %v299_v46 }
 0x1db   :  { %985 = vmatmul.mubr.f32.vlgmr.msra.gmra.mxu0 %v300_v47  ;;  %v991_v13 = vpop.f32.mrf.mxu1 }
 0x1dc   :  { %994 = vmatprep.mubr.msk.f32.mxu0 %vm1279_vm0, %v1278_v0  ;;  %993 = vmatpush3.msra.mxu0 %v412_v56 }
 0x1dd   :  { %1032 = vmatprep.subr.mxu0 %v1278_v0 }
 0x29b   :  { %v390_v49 = vpop.f32.mrf.mxu0 }
 0x29c   :  { %v391_v50 = vadd.f32 %v828_v48, %v390_v49 }
 0x29d   :  { %v986_v51 = vpop.f32.mrf.mxu0 }
 0x29e   :  { %v395_v52 = vmul.f32 0.5, %v391_v50  ;;  %405 = vst.msk [vmem:[#allocation12] sm:$0xff] %vm404_vm4, %v391_v50 }
 0x2a0   :  { %v396_v53 = vmul.f32 1.442695, %v395_v52 }
 0x2a2   :  { %1079 = vpow2.f32 %v396_v53 }
 0x2af   :  { %v1080_v62 = vpop.eup %1079 }
 0x2b0   :  { %399 = vrot.lane.b32.xlu0 %v1080_v62, %s1280_s3 }
 0x2b4   :  { %407 = vrot.lane.b32.xlu0 %v391_v50, %s1280_s3 }
 0x322   :  { %v400_v8 = vpop.permute.xlu0 %399 }
 0x323   :  { %v402_v9 = vmul.f32 %v400_v8, %v394_v7 }
 0x325   :  { %v403_v10 = vadd.f32 %v402_v9, %v391_v50 }
 0x326   :  { %v408_v11 = vpop.permute.xlu0 %407 }
 0x327   :  { %410 = vst.msk [vmem:[#allocation14] sm:$0xff] %vm404_vm4, %v408_v11  ;;  %411 = vst.msk [vmem:[#allocation15] sm:$0xff] %vm404_vm4, %v403_v10  ;;  %995 = vmatmul.mubr.msk.f32.vlgmr.msra.gmra.mxu0 %vm404_vm4, %v403_v10 }
 0x328   :  { %1064 = vmatprep.mubr.msk.f32.mxu0 %vm1279_vm0, %v1278_v0  ;;  %1033 = vmatpush3.msra.mxu0 %v688_v18 }
 0x329   :  { %1034 = vmatprep.subr.mxu0 %v1278_v0 }
 0x32a   :  { %1035 = vmatpush3.msra.mxu0 %v687_v19 }
 0x32b   :  { %1036 = vmatprep.subr.mxu0 %v1278_v0 }
 0x32c   :  { %1037 = vmatpush3.msra.mxu0 %v686_v20 }
 0x32d   :  { %1038 = vmatprep.subr.mxu0 %v1278_v0 }
 0x32e   :  { %1039 = vmatpush3.msra.mxu0 %v685_v21 }
 0x32f   :  { %1040 = vmatprep.subr.mxu0 %v1278_v0 }
 0x330   :  { %1041 = vmatpush3.msra.mxu0 %v684_v22 }
 0x331   :  { %1042 = vmatprep.subr.mxu0 %v1278_v0 }
 0x332   :  { %1043 = vmatpush3.msra.mxu0 %v683_v23 }
 0x333   :  { %1044 = vmatprep.subr.mxu0 %v1278_v0 }
 0x334   :  { %1045 = vmatpush3.msra.mxu0 %v682_v24 }
 0x335   :  { %1046 = vmatprep.subr.mxu0 %v1278_v0 }
 0x336   :  { %1047 = vmatpush3.msra.mxu0 %v681_v25 }
 0x337   :  { %1048 = vmatprep.subr.mxu0 %v1278_v0 }
 0x338   :  { %1049 = vmatpush3.msra.mxu0 %v680_v26 }
 0x339   :  { %1050 = vmatprep.subr.mxu0 %v1278_v0 }
 0x33a   :  { %1051 = vmatpush3.msra.mxu0 %v679_v27 }
 0x33b   :  { %1052 = vmatprep.subr.mxu0 %v1278_v0 }
 0x33c   :  { %1053 = vmatpush3.msra.mxu0 %v678_v28 }
 0x33d   :  { %1054 = vmatprep.subr.mxu0 %v1278_v0 }
 0x33e   :  { %1055 = vmatpush3.msra.mxu0 %v677_v29 }
 0x33f   :  { %1056 = vmatprep.subr.mxu0 %v1278_v0 }
 0x340   :  { %1057 = vmatpush3.msra.mxu0 %v676_v30 }
 0x341   :  { %1058 = vmatprep.subr.mxu0 %v1278_v0 }
 0x342   :  { %1059 = vmatpush3.msra.mxu0 %v675_v38 }
 0x343   :  { %1060 = vmatprep.subr.mxu0 %v1278_v0 }
 0x344   :  { %1061 = vmatpush3.msra.mxu0 %v674_v39 }
 0x345   :  { %1062 = vmatprep.subr.mxu0 %v1278_v0 }
 0x346   :  { %1063 = vmatpush3.msra.mxu0 %v673_v40 }
 0x3e7   :  { %v562_v31 = vpop.f32.mrf.mxu0 }
 0x3e8   :  { %v563_v33 = vadd.f32 %v562_v31, %v489_v12 }
 0x3e9   :  { %v996_v34 = vpop.f32.mrf.mxu0 }
 0x3ea   :  { %v573_v35 = vadd.f32 %v832_v32, %v563_v33 }
 0x3ec   :  { %v575_v36 = vmul.f32 0.1, %v573_v35  ;;  %vm574_vm7 = vcmp.gt.f32.partialorder %v573_v35, 0.0 }
 0x3ee   :  { %v576_v37 = vsel %vm574_vm7, %v573_v35, %v575_v36 }
 0x3ef   :  { %1030 = vmatmul.mubr.f32.vlgmr.msra.gmra.mxu1 %v576_v37 }
 0x4af   :  { %v666_v42 = vpop.f32.mrf.mxu1 }
 0x4b0   :  { %v667_v43 = vadd.f32 %v833_v41, %v666_v42 }
 0x4b1   :  { %v1031_v44 = vpop.f32.mrf.mxu1 }
 0x4b2   :  { %vm670_vm8 = vcmp.gt.f32.partialorder %v667_v43, 0.0  ;;  %v671_v45 = vmul.f32 0.1, %v667_v43 }
 0x4b4   :  { %v672_v46 = vsel %vm670_vm8, %v667_v43, %v671_v45 }
 0x4b5   :  { %1065 = vmatmul.mubr.f32.vlgmr.msra.gmra.mxu0 %v672_v46 }
 0x4b6   :  { %1192 = shalt.err (!%p1189_p1)
}
 0x4b7   :  { %786 = dma.vmem_to_hbm [thread:$0]  %s784_s7, 128, %s1733_s17, [#allocation13]  }
 0x4b8   :  { %s1282_s13 = smov [#allocation14]   ;;  %s1283_s1 = smov [#allocation15]  }
 0x4b9   :  { %s793_s30 = sshll.u32 %s1282_s13, 4  ;;  %s803_s10 = sshll.u32 %s1283_s1, 4  ;;  %s794_s30 = int_to_ptr.vmem [resolvable:$true] %s793_s30  ;;  %s804_s10 = int_to_ptr.vmem [resolvable:$true] %s803_s10 }
 0x4ba   :  { %s1201_s22 = scalar_lea.vmem %s794_s30, 128  ;;  %p1206_p3 = scmp.lt.s32.totalorder %s794_s30, %s794_s30 }
 0x4bb   :  { %p1202_p2 = scmp.ne.s32.totalorder %s794_s30, %s1201_s22  ;;  %p1207_p4 = scmp.lt.s32.totalorder %s1201_s22, %s1201_s22 }
 0x4bd   :  { %p1208_p5 = por %p1207_p4, %p1206_p3 }
 0x4bf   :  { %p1209_p6 = pnand %p1208_p5, %p1202_p2 }
 0x4c1   :  { %1212 = shalt.err (!%p1209_p6)
}
 0x4c2   :  { %796 = dma.vmem_to_hbm [thread:$0]  %s794_s30, 128, %s1734_s18, [#allocation13]  }
 0x4c3   :  { %s1221_s8 = scalar_lea.vmem %s804_s10, 128  ;;  %p1226_p8 = scmp.lt.s32.totalorder %s804_s10, %s804_s10 }
 0x4c4   :  { %p1222_p7 = scmp.ne.s32.totalorder %s804_s10, %s1221_s8  ;;  %p1227_p9 = scmp.lt.s32.totalorder %s1221_s8, %s1221_s8 }
 0x4c6   :  { %p1228_p10 = por %p1227_p9, %p1226_p8 }
 0x4c8   :  { %p1229_p11 = pnand %p1228_p10, %p1222_p7 }
 0x4ca   :  { %1232 = shalt.err (!%p1229_p11)
}
 0x4cb   :  { %806 = dma.vmem_to_hbm [thread:$0]  %s804_s10, 128, %s1735_s19, [#allocation16]   ;;  %v834_v0 = vld [vmem:[%s1731_s15] ss:$0 sm:$0xff] }
 0x4cc   :  { %s1284_s24 = smov [#allocation11]  }
 0x4cd   :  { %s773_s25 = sshll.u32 %s1284_s24, 4  ;;  %s774_s25 = int_to_ptr.vmem [resolvable:$true] %s773_s25 }
 0x4ce   :  { %s1241_s18 = scalar_lea.vmem %s774_s25, 128  ;;  %p1246_p13 = scmp.lt.s32.totalorder %s774_s25, %s774_s25 }
 0x4cf   :  { %p1242_p12 = scmp.ne.s32.totalorder %s774_s25, %s1241_s18  ;;  %p1247_p0 = scmp.lt.s32.totalorder %s1241_s18, %s1241_s18 }
 0x4d1   :  { %p1248_p1 = por %p1247_p0, %p1246_p13 }
 0x4d3   :  { %p1249_p2 = pnand %p1248_p1, %p1242_p12 }
 0x575   :  { %v762_v47 = vpop.f32.mrf.mxu0 }
 0x576   :  { %v763_v48 = vadd.f32 %v834_v0, %v762_v47 }
 0x577   :  { %v1066_v49 = vpop.f32.mrf.mxu0 }
 0x578   :  { %766 = vst.msk [vmem:[#allocation11] sm:$0xff] %vm128_vm1, %v763_v48 }
 0x579   :  { %1252 = shalt.err (!%p1249_p2)
}
 0x57a   :  { %776 = dma.vmem_to_hbm [thread:$0]  %s774_s25, 128, %s1732_s16, [#allocation4]  }
 0x57b   :  { %1267 = dma.done.wait [#allocation4], 128  }
 0x57c   :  { %1268 = vsyncadd [#allocation4], 4294967168 }
 0x57d   :  { %1269 = dma.done.wait [#allocation13], 256  }
 0x57e   :  { %1270 = vsyncadd [#allocation13], 4294967040 }
 0x57f   :  { %1271 = dma.done.wait [#allocation16], 128  }
 0x580   :  { %1272 = vsyncadd [#allocation16], 4294967168 }
 0x581   :  { %819 = vsyncpa [#allocation3], 1 }
 0x582   :  { %820 = vsyncpa [#allocation6], 1 }
 0x583   :  { %821 = vsyncpa [#allocation9], 1 }
 0x584   :  { %822 = vsyncpa [#allocation4], 1 }
 0x585   :  { %823 = vsyncpa [#allocation13], 1 }
 0x586   :  { %824 = vsyncpa [#allocation16], 1 }

// kernel: tpu_custom_call.1
= control target key start
LH: loop header
LB: loop body
LE: loop exit
PB: predicated region body
PF: predicated region fallthrough
CT: control target
= control target key end

     0   :  { %s1716_s0 = inlined_call_operand.hbm [shape: f32[8,16], index: 0, kind: input, shape index: {}]   ;;  %s1717_s1 = inlined_call_operand.hbm [shape: f32[8,7], index: 1, kind: input, shape index: {}]   ;;  %s1718_s2 = inlined_call_operand.hbm [shape: f32[8,8], index: 2, kind: input, shape index: {}]   ;;  %s1719_s3 = inlined_call_operand.vmem [shape: f32[16,128], index: 3, kind: input, shape index: {}]   ;;  %s1720_s4 = inlined_call_operand.vmem [shape: f32[1,128], index: 4, kind: input, shape index: {}]   ;;  %s1721_s5 = inlined_call_operand.vmem [shape: f32[128,128], index: 5, kind: input, shape index: {}]   ;;  %s1722_s6 = inlined_call_operand.vmem [shape: f32[1,128], index: 6, kind: input, shape index: {}]   ;;  %s1723_s7 = inlined_call_operand.vmem [shape: f32[128,16], index: 7, kind: input, shape index: {}]   ;;  %s1724_s8 = inlined_call_operand.hbm [shape: f32[1,16], index: 8, kind: input, shape index: {}]   ;;  %s1725_s9 = inlined_call_operand.vmem [shape: f32[8,128], index: 9, kind: input, shape index: {}]   ;;  %s1726_s10 = inlined_call_operand.vmem [shape: f32[7,128], index: 10, kind: input, shape index: {}]   ;;  %s1727_s11 = inlined_call_operand.hbm [shape: f32[1,128], index: 11, kind: input, shape index: {}]   ;;  %s1728_s12 = inlined_call_operand.vmem [shape: f32[128,128], index: 12, kind: input, shape index: {}]   ;;  %s1729_s13 = inlined_call_operand.vmem [shape: f32[1,128], index: 13, kind: input, shape index: {}]   ;;  %s1730_s14 = inlined_call_operand.vmem [shape: f32[128,16], index: 14, kind: input, shape index: {}]   ;;  %s1731_s15 = inlined_call_operand.vmem [shape: f32[1,16], index: 15, kind: input, shape index: {}]   ;;  %s1732_s16 = inlined_call_operand.hbm [shape: f32[8,16], index: 16, kind: output, shape index: {0}]   ;;  %s1733_s17 = inlined_call_operand.hbm [shape: f32[8,8], index: 17, kind: output, shape index: {1}]   ;;  %s1734_s18 = inlined_call_operand.hbm [shape: f32[8,8], index: 18, kind: output, shape index: {2}]   ;;  %s1735_s19 = inlined_call_operand.hbm [shape: f32[8,8], index: 19, kind: output, shape index: {3}]  }
   0x1   :  { %1737 = sst [smem:[#allocation23_spill]] %s1716_s0 }
   0x2   :  { %1738 = sst [smem:[#allocation24_spill]] %s1717_s1 }
   0x3   :  { %1739 = sst [smem:[#allocation25_spill]] %s1718_s2 }
   0x4   :  { %1740 = sst [smem:[#allocation26_spill]] %s1719_s3 }
   0x5   :  { %25 = vsyncpa [#allocation3], 0 }
   0x6   :  { %26 = vsyncpa [#allocation6], 0 }
   0x7   :  { %27 = vsyncpa [#allocation9], 0 }
   0x8   :  { %28 = vsyncpa [#allocation4], 0 }
   0x9   :  { %29 = vsyncpa [#allocation13], 0 }
   0xa   :  { %30 = vsyncpa [#allocation16], 0  ;;  %s1273_s0 = smov [#allocation5]   ;;  %s1274_s20 = smov [#allocation8]  }
   0xb   :  { %s47_s30 = sshll.u32 %s1273_s0, 4  ;;  %s77_s21 = sshll.u32 %s1274_s20, 4  ;;  %s48_s30 = int_to_ptr.vmem [resolvable:$true] %s47_s30  ;;  %s78_s21 = int_to_ptr.vmem [resolvable:$true] %s77_s21 }
   0xc   :  { %s1089_s1 = scalar_lea.vmem %s48_s30, 128  ;;  %p1094_p1 = scmp.lt.s32.totalorder %s48_s30, %s48_s30 }
   0xd   :  { %p1090_p0 = scmp.ne.s32.totalorder %s48_s30, %s1089_s1  ;;  %p1095_p2 = scmp.lt.s32.totalorder %s1089_s1, %s1089_s1 }
   0xf   :  { %p1096_p3 = por %p1095_p2, %p1094_p1 }
  0x11   :  { %p1097_p4 = pnand %p1096_p3, %p1090_p0 }
  0x13   :  { %1100 = shalt.err (!%p1097_p4)
}
  0x14   :  { %s1741_s23 = sld [smem:[#allocation24_spill]]  ;;  %s1109_s24 = scalar_lea.vmem %s78_s21, 16 }
  0x15   :  { %p1110_p5 = scmp.ne.s32.totalorder %s78_s21, %s1109_s24  ;;  %s1113_s25 = scalar_lea.vmem %s78_s21, 32 }
  0x16   :  { %p1114_p6 = scmp.lt.s32.totalorder %s78_s21, %s78_s21  ;;  %p1115_p7 = scmp.lt.s32.totalorder %s1113_s25, %s1109_s24 }
  0x18   :  { %p1116_p8 = por %p1115_p7, %p1114_p6 }
  0x1a   :  { %50 = dma.hbm_to_vmem [thread:$0]  %s1741_s23, 128, %s48_s30, [#allocation6]  }
  0x1b   :  { %p1117_p9 = pnand %p1116_p8, %p1110_p5 }
  0x1d   :  { %1120 = shalt.err (!%p1117_p9)
}
  0x1e   :  { %80 = dma.hbm_to_vmem [thread:$0]  %s1724_s8, 16, %s78_s21, [#allocation9]  }
  0x1f   :  { %s1275_s27 = smov [#allocation2]   ;;  %s1276_s29 = smov [#allocation7]  }
  0x20   :  { %s37_s28 = sshll.u32 %s1275_s27, 4  ;;  %s57_s0 = sshll.u32 %s1276_s29, 4  ;;  %s38_s28 = int_to_ptr.vmem [resolvable:$true] %s37_s28  ;;  %s58_s0 = int_to_ptr.vmem [resolvable:$true] %s57_s0 }
  0x21   :  { %s1129_s20 = scalar_lea.vmem %s38_s28, 128  ;;  %p1134_p11 = scmp.lt.s32.totalorder %s38_s28, %s38_s28 }
  0x22   :  { %p1130_p10 = scmp.ne.s32.totalorder %s38_s28, %s1129_s20  ;;  %p1135_p12 = scmp.lt.s32.totalorder %s1129_s20, %s1129_s20 }
  0x24   :  { %p1136_p13 = por %p1135_p12, %p1134_p11 }
  0x26   :  { %p1137_p0 = pnand %p1136_p13, %p1130_p10 }
  0x28   :  { %1140 = shalt.err (!%p1137_p0)
}
  0x29   :  { %s1742_s22 = sld [smem:[#allocation23_spill]]  ;;  %s1149_s2 = scalar_lea.vmem %s58_s0, 128 }
  0x2a   :  { %p1150_p1 = scmp.ne.s32.totalorder %s58_s0, %s1149_s2  ;;  %p1154_p2 = scmp.lt.s32.totalorder %s58_s0, %s58_s0 }
  0x2b   :  { %p1155_p3 = scmp.lt.s32.totalorder %s1149_s2, %s1149_s2 }
  0x2d   :  { %p1156_p4 = por %p1155_p3, %p1154_p2 }
  0x2f   :  { %40 = dma.hbm_to_vmem [thread:$0]  %s1742_s22, 128, %s38_s28, [#allocation3]  }
  0x30   :  { %p1157_p5 = pnand %p1156_p4, %p1150_p1 }
  0x32   :  { %1160 = shalt.err (!%p1157_p5)
}
  0x33   :  { %s1743_s23 = sld [smem:[#allocation25_spill]]  ;;  %s1277_s24 = smov [#allocation10]  }
  0x34   :  { %s91_s25 = sshll.u32 %s1277_s24, 4  ;;  %s92_s25 = int_to_ptr.vmem [resolvable:$true] %s91_s25 }
  0x35   :  { %s1169_s3 = scalar_lea.vmem %s92_s25, 16  ;;  %s1173_s26 = scalar_lea.vmem %s92_s25, 32 }
  0x36   :  { %p1170_p6 = scmp.ne.s32.totalorder %s92_s25, %s1169_s3  ;;  %p1174_p7 = scmp.lt.s32.totalorder %s92_s25, %s92_s25 }
  0x37   :  { %p1175_p8 = scmp.lt.s32.totalorder %s1173_s26, %s1169_s3 }
  0x39   :  { %60 = dma.hbm_to_vmem [thread:$0]  %s1743_s23, 128, %s58_s0, [#allocation6]  }
  0x3a   :  { %p1176_p9 = por %p1175_p8, %p1174_p7 }
  0x3c   :  { %p1177_p10 = pnand %p1176_p9, %p1170_p6 }
  0x3e   :  { %1180 = shalt.err (!%p1177_p10)
}
  0x3f   :  { %94 = dma.hbm_to_vmem [thread:$0]  %s1727_s11, 16, %s92_s25, [#allocation9]  }
  0x40   :  { %1261 = dma.done.wait [#allocation3], 128  }
  0x41   :  { %1262 = vsyncadd [#allocation3], 4294967168 }
  0x42   :  { %1263 = dma.done.wait [#allocation6], 256  }
  0x43   :  { %1264 = vsyncadd [#allocation6], 4294967040 }
  0x44   :  { %1265 = dma.done.wait [#allocation9], 32  }
  0x45   :  { %1266 = vsyncadd [#allocation9], 4294967264  ;;  %v1278_v0 = vmov 0.0   ;;  %vm1279_vm0 = vmmov 0   ;;  %s1744_s0 = sld [smem:[#allocation26_spill]]  ;;  %v118_v3 = vld [vmem:[#allocation2] sm:$0xff] }
  0x46   :  { %910 = vmatprep.subr.mxu0 %v1278_v0  ;;  %914 = vmatprep.mubr.msk.f32.mxu0 %vm1279_vm0, %v1278_v0  ;;  %vm128_vm1 = vcmask 130048   ;;  %v220_v4 = vld [vmem:[%s1721_s5 + $0x78] sm:$0xff]  ;;  %v219_v5 = vld [vmem:[%s1721_s5 + $0x70] sm:$0xff]  ;;  %v218_v6 = vld [vmem:[%s1721_s5 + $0x68] sm:$0xff]  ;;  %vm404_vm4 = vcmask 64512   ;;  %vm419_vm5 = vcmask 1046528  }
  0x47   :  { %917 = vmatprep.subr.mxu1 %v1278_v0  ;;  %949 = vmatprep.mubr.msk.f32.mxu1 %vm1279_vm0, %v1278_v0  ;;  %v217_v7 = vld [vmem:[%s1721_s5 + $0x60] sm:$0xff]  ;;  %v216_v8 = vld [vmem:[%s1721_s5 + $0x58] sm:$0xff]  ;;  %v215_v9 = vld [vmem:[%s1721_s5 + $0x50] sm:$0xff]  ;;  %vm415_vm6 = vcmask 56320   ;;  %s1280_s3 = smov 120  }
  0x48   :  { %918 = vmatpush3.msra.mxu1 %v220_v4  ;;  %v214_v10 = vld [vmem:[%s1721_s5 + $0x48] sm:$0xff]  ;;  %v213_v11 = vld [vmem:[%s1721_s5 + $0x40] sm:$0xff]  ;;  %v212_v12 = vld [vmem:[%s1721_s5 + $0x38] sm:$0xff] }
  0x49   :  { %919 = vmatprep.subr.mxu1 %v1278_v0  ;;  %v211_v13 = vld [vmem:[%s1721_s5 + $0x30] sm:$0xff]  ;;  %v210_v14 = vld [vmem:[%s1721_s5 + $0x28] sm:$0xff]  ;;  %v209_v15 = vld [vmem:[%s1721_s5 + $0x20] sm:$0xff] }
  0x4a   :  { %920 = vmatpush3.msra.mxu1 %v219_v5  ;;  %v208_v16 = vld [vmem:[%s1721_s5 + $0x18] sm:$0xff]  ;;  %v207_v17 = vld [vmem:[%s1721_s5 + $0x10] sm:$0xff]  ;;  %v206_v18 = vld [vmem:[%s1721_s5 + $0x8] sm:$0xff] }
  0x4b   :  { %v120_v1 = vld [vmem:[%s1744_s0 + $0x8] sm:$0xff]  ;;  %v119_v2 = vld [vmem:[%s1744_s0] sm:$0xff]  ;;  %921 = vmatprep.subr.mxu1 %v1278_v0  ;;  %v316_v20 = vld [vmem:[%s1723_s7 + $0x78] sm:$0xff] }
  0x4c   :  { %911 = vmatpush3.msra.mxu0 %v120_v1  ;;  %922 = vmatpush3.msra.mxu1 %v218_v6  ;;  %v205_v19 = vld [vmem:[%s1721_s5] sm:$0xff]  ;;  %v315_v21 = vld [vmem:[%s1723_s7 + $0x70] sm:$0xff]  ;;  %v314_v22 = vld [vmem:[%s1723_s7 + $0x68] sm:$0xff] }
  0x4d   :  { %912 = vmatprep.subr.mxu0 %v1278_v0  ;;  %923 = vmatprep.subr.mxu1 %v1278_v0  ;;  %v313_v23 = vld [vmem:[%s1723_s7 + $0x60] sm:$0xff]  ;;  %v312_v24 = vld [vmem:[%s1723_s7 + $0x58] sm:$0xff]  ;;  %v311_v25 = vld [vmem:[%s1723_s7 + $0x50] sm:$0xff] }
  0x4e   :  { %913 = vmatpush3.msra.mxu0 %v119_v2  ;;  %924 = vmatpush3.msra.mxu1 %v217_v7  ;;  %v310_v26 = vld [vmem:[%s1723_s7 + $0x48] sm:$0xff]  ;;  %v309_v27 = vld [vmem:[%s1723_s7 + $0x40] sm:$0xff]  ;;  %v308_v28 = vld [vmem:[%s1723_s7 + $0x38] sm:$0xff] }
  0x4f   :  { %915 = vmatmul.mubr.msk.f32.vlgmr.msra.gmra.mxu0 %vm128_vm1, %v118_v3  ;;  %952 = vmatprep.subr.mxu0 %v1278_v0  ;;  %v307_v29 = vld [vmem:[%s1723_s7 + $0x30] sm:$0xff]  ;;  %v306_v30 = vld [vmem:[%s1723_s7 + $0x28] sm:$0xff]  ;;  %v305_v31 = vld [vmem:[%s1723_s7 + $0x20] sm:$0xff] }
  0x50   :  { %984 = vmatprep.mubr.msk.f32.mxu0 %vm1279_vm0, %v1278_v0  ;;  %925 = vmatprep.subr.mxu1 %v1278_v0  ;;  %v304_v32 = vld [vmem:[%s1723_s7 + $0x18] sm:$0xff]  ;;  %v825_v33 = vld [vmem:[%s1720_s4] ss:$0 sm:$0xff]  ;;  %v303_v39 = vld [vmem:[%s1723_s7 + $0x10] sm:$0xff] }
  0x51   :  { %926 = vmatpush3.msra.mxu1 %v216_v8  ;;  %953 = vmatpush3.msra.mxu0 %v316_v20  ;;  %v302_v40 = vld [vmem:[%s1723_s7 + $0x8] sm:$0xff]  ;;  %v301_v41 = vld [vmem:[%s1723_s7] sm:$0xff]  ;;  %v828_v48 = vld [vmem:[#allocation8] ss:$0 sm:$0xff] }
  0x52   :  { %927 = vmatprep.subr.mxu1 %v1278_v0  ;;  %954 = vmatprep.subr.mxu0 %v1278_v0  ;;  %v827_v42 = vld [vmem:[%s1722_s6] ss:$0 sm:$0xff]  ;;  %v413_v55 = vld [vmem:[#allocation5] sm:$0xff]  ;;  %v592_v57 = vld [vmem:[%s1728_s12 + $0x78] sm:$0xff]  ;;  %s1281_s6 = smov [#allocation12]  }
  0x53   :  { %928 = vmatpush3.msra.mxu1 %v215_v9  ;;  %955 = vmatpush3.msra.mxu0 %v315_v21  ;;  %v414_v54 = vld [vmem:[%s1726_s10] sm:$0x7f]  ;;  %v591_v58 = vld [vmem:[%s1728_s12 + $0x70] sm:$0xff]  ;;  %v590_v59 = vld [vmem:[%s1728_s12 + $0x68] sm:$0xff]  ;;  %s783_s7 = sshll.u32 %s1281_s6, 4  ;;  %s784_s7 = int_to_ptr.vmem [resolvable:$true] %s783_s7 }
  0x54   :  { %929 = vmatprep.subr.mxu1 %v1278_v0  ;;  %956 = vmatprep.subr.mxu0 %v1278_v0  ;;  %v412_v56 = vld [vmem:[%s1725_s9] sm:$0xff]  ;;  %v588_v61 = vld [vmem:[%s1728_s12 + $0x58] sm:$0xff]  ;;  %v587_v63 = vld [vmem:[%s1728_s12 + $0x50] sm:$0xff]  ;;  %s1181_s0 = scalar_lea.vmem %s784_s7, 128  ;;  %p1186_p12 = scmp.lt.s32.totalorder %s784_s7, %s784_s7 }
  0x55   :  { %930 = vmatpush3.msra.mxu1 %v214_v10  ;;  %957 = vmatpush3.msra.mxu0 %v314_v22  ;;  %v589_v60 = vld [vmem:[%s1728_s12 + $0x60] sm:$0xff]  ;;  %v586_v1 = vld [vmem:[%s1728_s12 + $0x48] sm:$0xff]  ;;  %v584_v3 = vld [vmem:[%s1728_s12 + $0x38] sm:$0xff]  ;;  %p1182_p11 = scmp.ne.s32.totalorder %s784_s7, %s1181_s0  ;;  %p1187_p13 = scmp.lt.s32.totalorder %s1181_s0, %s1181_s0 }
  0x56   :  { %931 = vmatprep.subr.mxu1 %v1278_v0  ;;  %958 = vmatprep.subr.mxu0 %v1278_v0  ;;  %v585_v2 = vld [vmem:[%s1728_s12 + $0x40] sm:$0xff]  ;;  %v583_v4 = vld [vmem:[%s1728_s12 + $0x30] sm:$0xff]  ;;  %v582_v5 = vld [vmem:[%s1728_s12 + $0x28] sm:$0xff] }
  0x57   :  { %932 = vmatpush3.msra.mxu1 %v213_v11  ;;  %959 = vmatpush3.msra.mxu0 %v313_v23  ;;  %v581_v6 = vld [vmem:[%s1728_s12 + $0x20] sm:$0xff]  ;;  %v394_v7 = vld [vmem:[#allocation7] sm:$0xff]  ;;  %v686_v20 = vld [vmem:[%s1730_s14 + $0x68] sm:$0xff]  ;;  %p1188_p0 = por %p1187_p13, %p1186_p12 }
  0x58   :  { %933 = vmatprep.subr.mxu1 %v1278_v0  ;;  %960 = vmatprep.subr.mxu0 %v1278_v0  ;;  %v685_v21 = vld [vmem:[%s1730_s14 + $0x60] sm:$0xff]  ;;  %v684_v22 = vld [vmem:[%s1730_s14 + $0x58] sm:$0xff]  ;;  %v683_v23 = vld [vmem:[%s1730_s14 + $0x50] sm:$0xff] }
  0x59   :  { %934 = vmatpush3.msra.mxu1 %v212_v12  ;;  %961 = vmatpush3.msra.mxu0 %v312_v24  ;;  %v682_v24 = vld [vmem:[%s1730_s14 + $0x48] sm:$0xff]  ;;  %p1189_p1 = pnand %p1188_p0, %p1182_p11 }
  0x5a   :  { %935 = vmatprep.subr.mxu1 %v1278_v0  ;;  %962 = vmatprep.subr.mxu0 %v1278_v0 }
  0x5b   :  { %936 = vmatpush3.msra.mxu1 %v211_v13  ;;  %963 = vmatpush3.msra.mxu0 %v311_v25  ;;  %v681_v25 = vld [vmem:[%s1730_s14 + $0x40] sm:$0xff] }
  0x5c   :  { %937 = vmatprep.subr.mxu1 %v1278_v0  ;;  %964 = vmatprep.subr.mxu0 %v1278_v0 }
  0x5d   :  { %938 = vmatpush3.msra.mxu1 %v210_v14  ;;  %965 = vmatpush3.msra.mxu0 %v310_v26  ;;  %v580_v14 = vld [vmem:[%s1728_s12 + $0x18] sm:$0xff] }
  0x5e   :  { %939 = vmatprep.subr.mxu1 %v1278_v0  ;;  %966 = vmatprep.subr.mxu0 %v1278_v0  ;;  %v680_v26 = vld [vmem:[%s1730_s14 + $0x38] sm:$0xff] }
  0x5f   :  { %940 = vmatpush3.msra.mxu1 %v209_v15  ;;  %967 = vmatpush3.msra.mxu0 %v309_v27  ;;  %v579_v15 = vld [vmem:[%s1728_s12 + $0x10] sm:$0xff] }
  0x60   :  { %941 = vmatprep.subr.mxu1 %v1278_v0  ;;  %968 = vmatprep.subr.mxu0 %v1278_v0  ;;  %v679_v27 = vld [vmem:[%s1730_s14 + $0x30] sm:$0xff] }
  0x61   :  { %942 = vmatpush3.msra.mxu1 %v208_v16  ;;  %969 = vmatpush3.msra.mxu0 %v308_v28  ;;  %v578_v16 = vld [vmem:[%s1728_s12 + $0x8] sm:$0xff] }
  0x62   :  { %943 = vmatprep.subr.mxu1 %v1278_v0  ;;  %970 = vmatprep.subr.mxu0 %v1278_v0  ;;  %v678_v28 = vld [vmem:[%s1730_s14 + $0x28] sm:$0xff] }
  0x63   :  { %944 = vmatpush3.msra.mxu1 %v207_v17  ;;  %971 = vmatpush3.msra.mxu0 %v307_v29  ;;  %v577_v17 = vld [vmem:[%s1728_s12] sm:$0xff] }
  0x64   :  { %945 = vmatprep.subr.mxu1 %v1278_v0  ;;  %972 = vmatprep.subr.mxu0 %v1278_v0  ;;  %v677_v29 = vld [vmem:[%s1730_s14 + $0x20] sm:$0xff] }
  0x65   :  { %946 = vmatpush3.msra.mxu1 %v206_v18  ;;  %973 = vmatpush3.msra.mxu0 %v306_v30  ;;  %v688_v18 = vld [vmem:[%s1730_s14 + $0x78] sm:$0xff] }
  0x66   :  { %947 = vmatprep.subr.mxu1 %v1278_v0  ;;  %974 = vmatprep.subr.mxu0 %v1278_v0  ;;  %v676_v30 = vld [vmem:[%s1730_s14 + $0x18] sm:$0xff] }
  0x67   :  { %948 = vmatpush3.msra.mxu1 %v205_v19  ;;  %975 = vmatpush3.msra.mxu0 %v305_v31  ;;  %v687_v19 = vld [vmem:[%s1730_s14 + $0x70] sm:$0xff] }
  0x68   :  { %987 = vmatprep.subr.mxu1 %v1278_v0  ;;  %976 = vmatprep.subr.mxu0 %v1278_v0 }
  0x69   :  { %977 = vmatpush3.msra.mxu0 %v304_v32  ;;  %v832_v32 = vld [vmem:[#allocation10] ss:$0 sm:$0xff] }
  0x6a   :  { %978 = vmatprep.subr.mxu0 %v1278_v0 }
  0x6b   :  { %979 = vmatpush3.msra.mxu0 %v303_v39  ;;  %v674_v39 = vld [vmem:[%s1730_s14 + $0x8] sm:$0xff] }
  0x6c   :  { %980 = vmatprep.subr.mxu0 %v1278_v0 }
  0x6d   :  { %981 = vmatpush3.msra.mxu0 %v302_v40  ;;  %v673_v40 = vld [vmem:[%s1730_s14] sm:$0xff] }
  0x6e   :  { %982 = vmatprep.subr.mxu0 %v1278_v0 }
  0x6f   :  { %983 = vmatpush3.msra.mxu0 %v301_v41  ;;  %v833_v41 = vld [vmem:[%s1729_s13] ss:$0 sm:$0xff] }
  0x70   :  { %992 = vmatprep.subr.mxu0 %v1278_v0 }
 0x10f   :  { %v198_v34 = vpop.f32.mrf.mxu0 }
 0x110   :  { %v199_v35 = vadd.f32 %v825_v33, %v198_v34 }
 0x111   :  { %v916_v36 = vpop.f32.mrf.mxu0 }
 0x112   :  { %v203_v37 = vmul.f32 0.1, %v199_v35  ;;  %vm202_vm2 = vcmp.gt.f32.partialorder %v199_v35, 0.0 }
 0x114   :  { %v204_v38 = vsel %vm202_vm2, %v199_v35, %v203_v37 }
 0x115   :  { %950 = vmatmul.mubr.f32.vlgmr.msra.gmra.mxu1 %v204_v38  ;;  %v675_v38 = vld [vmem:[%s1730_s14 + $0x10] sm:$0xff] }
 0x116   :  { %989 = vmatprep.mubr.msk.f32.mxu1 %vm1279_vm0, %v1278_v0  ;;  %988 = vmatpush3.msk.msra.mxu1 %vm419_vm5, %v414_v54 }
 0x117   :  { %997 = vmatprep.subr.mxu1 %v1278_v0 }
 0x119   :  { %990 = vmatmul.mubr.msk.f32.vlgmr.msra.gmra.mxu1 %vm415_vm6, %v413_v55 }
 0x11a   :  { %1029 = vmatprep.mubr.msk.f32.mxu1 %vm1279_vm0, %v1278_v0  ;;  %998 = vmatpush3.msra.mxu1 %v592_v57 }
 0x11b   :  { %999 = vmatprep.subr.mxu1 %v1278_v0 }
 0x11c   :  { %1000 = vmatpush3.msra.mxu1 %v591_v58 }
 0x11d   :  { %1001 = vmatprep.subr.mxu1 %v1278_v0 }
 0x11e   :  { %1002 = vmatpush3.msra.mxu1 %v590_v59 }
 0x11f   :  { %1003 = vmatprep.subr.mxu1 %v1278_v0 }
 0x120   :  { %1004 = vmatpush3.msra.mxu1 %v589_v60 }
 0x121   :  { %1005 = vmatprep.subr.mxu1 %v1278_v0 }
 0x122   :  { %1006 = vmatpush3.msra.mxu1 %v588_v61 }
 0x123   :  { %1007 = vmatprep.subr.mxu1 %v1278_v0 }
 0x124   :  { %1008 = vmatpush3.msra.mxu1 %v587_v63 }
 0x125   :  { %1009 = vmatprep.subr.mxu1 %v1278_v0 }
 0x126   :  { %1010 = vmatpush3.msra.mxu1 %v586_v1 }
 0x127   :  { %1011 = vmatprep.subr.mxu1 %v1278_v0 }
 0x128   :  { %1012 = vmatpush3.msra.mxu1 %v585_v2 }
 0x129   :  { %1013 = vmatprep.subr.mxu1 %v1278_v0 }
 0x12a   :  { %1014 = vmatpush3.msra.mxu1 %v584_v3 }
 0x12b   :  { %1015 = vmatprep.subr.mxu1 %v1278_v0 }
 0x12c   :  { %1016 = vmatpush3.msra.mxu1 %v583_v4 }
 0x12d   :  { %1017 = vmatprep.subr.mxu1 %v1278_v0 }
 0x12e   :  { %1018 = vmatpush3.msra.mxu1 %v582_v5 }
 0x12f   :  { %1019 = vmatprep.subr.mxu1 %v1278_v0 }
 0x130   :  { %1020 = vmatpush3.msra.mxu1 %v581_v6 }
 0x131   :  { %1021 = vmatprep.subr.mxu1 %v1278_v0 }
 0x132   :  { %1022 = vmatpush3.msra.mxu1 %v580_v14 }
 0x133   :  { %1023 = vmatprep.subr.mxu1 %v1278_v0 }
 0x134   :  { %1024 = vmatpush3.msra.mxu1 %v579_v15 }
 0x135   :  { %1025 = vmatprep.subr.mxu1 %v1278_v0 }
 0x136   :  { %1026 = vmatpush3.msra.mxu1 %v578_v16 }
 0x137   :  { %1027 = vmatprep.subr.mxu1 %v1278_v0 }
 0x138   :  { %1028 = vmatpush3.msra.mxu1 %v577_v17 }
 0x1d5   :  { %v294_v43 = vpop.f32.mrf.mxu1 }
 0x1d6   :  { %v295_v44 = vadd.f32 %v827_v42, %v294_v43 }
 0x1d7   :  { %v951_v45 = vpop.f32.mrf.mxu1 }
 0x1d8   :  { %vm298_vm3 = vcmp.gt.f32.partialorder %v295_v44, 0.0  ;;  %v299_v46 = vmul.f32 0.1, %v295_v44 }
 0x1d9   :  { %v489_v12 = vpop.f32.mrf.mxu1 }
 0x1da   :  { %v300_v47 = vsel %vm298_vm3, %v295_v44, %v299_v46 }
 0x1db   :  { %985 = vmatmul.mubr.f32.vlgmr.msra.gmra.mxu0 %v300_v47  ;;  %v991_v13 = vpop.f32.mrf.mxu1 }
 0x1dc   :  { %994 = vmatprep.mubr.msk.f32.mxu0 %vm1279_vm0, %v1278_v0  ;;  %993 = vmatpush3.msra.mxu0 %v412_v56 }
 0x1dd   :  { %1032 = vmatprep.subr.mxu0 %v1278_v0 }
 0x29b   :  { %v390_v49 = vpop.f32.mrf.mxu0 }
 0x29c   :  { %v391_v50 = vadd.f32 %v828_v48, %v390_v49 }
 0x29d   :  { %v986_v51 = vpop.f32.mrf.mxu0 }
 0x29e   :  { %v395_v52 = vmul.f32 0.5, %v391_v50  ;;  %405 = vst.msk [vmem:[#allocation12] sm:$0xff] %vm404_vm4, %v391_v50 }
 0x2a0   :  { %v396_v53 = vmul.f32 1.442695, %v395_v52 }
 0x2a2   :  { %1079 = vpow2.f32 %v396_v53 }
 0x2af   :  { %v1080_v62 = vpop.eup %1079 }
 0x2b0   :  { %399 = vrot.lane.b32.xlu0 %v1080_v62, %s1280_s3 }
 0x2b4   :  { %407 = vrot.lane.b32.xlu0 %v391_v50, %s1280_s3 }
 0x322   :  { %v400_v8 = vpop.permute.xlu0 %399 }
 0x323   :  { %v402_v9 = vmul.f32 %v400_v8, %v394_v7 }
 0x325   :  { %v403_v10 = vadd.f32 %v402_v9, %v391_v50 }
 0x326   :  { %v408_v11 = vpop.permute.xlu0 %407 }
 0x327   :  { %410 = vst.msk [vmem:[#allocation14] sm:$0xff] %vm404_vm4, %v408_v11  ;;  %411 = vst.msk [vmem:[#allocation15] sm:$0xff] %vm404_vm4, %v403_v10  ;;  %995 = vmatmul.mubr.msk.f32.vlgmr.msra.gmra.mxu0 %vm404_vm4, %v403_v10 }
 0x328   :  { %1064 = vmatprep.mubr.msk.f32.mxu0 %vm1279_vm0, %v1278_v0  ;;  %1033 = vmatpush3.msra.mxu0 %v688_v18 }
 0x329   :  { %1034 = vmatprep.subr.mxu0 %v1278_v0 }
 0x32a   :  { %1035 = vmatpush3.msra.mxu0 %v687_v19 }
 0x32b   :  { %1036 = vmatprep.subr.mxu0 %v1278_v0 }
 0x32c   :  { %1037 = vmatpush3.msra.mxu0 %v686_v20 }
 0x32d   :  { %1038 = vmatprep.subr.mxu0 %v1278_v0 }
 0x32e   :  { %1039 = vmatpush3.msra.mxu0 %v685_v21 }
 0x32f   :  { %1040 = vmatprep.subr.mxu0 %v1278_v0 }
 0x330   :  { %1041 = vmatpush3.msra.mxu0 %v684_v22 }
 0x331   :  { %1042 = vmatprep.subr.mxu0 %v1278_v0 }
 0x332   :  { %1043 = vmatpush3.msra.mxu0 %v683_v23 }
 0x333   :  { %1044 = vmatprep.subr.mxu0 %v1278_v0 }
 0x334   :  { %1045 = vmatpush3.msra.mxu0 %v682_v24 }
 0x335   :  { %1046 = vmatprep.subr.mxu0 %v1278_v0 }
 0x336   :  { %1047 = vmatpush3.msra.mxu0 %v681_v25 }
 0x337   :  { %1048 = vmatprep.subr.mxu0 %v1278_v0 }
 0x338   :  { %1049 = vmatpush3.msra.mxu0 %v680_v26 }
 0x339   :  { %1050 = vmatprep.subr.mxu0 %v1278_v0 }
 0x33a   :  { %1051 = vmatpush3.msra.mxu0 %v679_v27 }
 0x33b   :  { %1052 = vmatprep.subr.mxu0 %v1278_v0 }
 0x33c   :  { %1053 = vmatpush3.msra.mxu0 %v678_v28 }
 0x33d   :  { %1054 = vmatprep.subr.mxu0 %v1278_v0 }
 0x33e   :  { %1055 = vmatpush3.msra.mxu0 %v677_v29 }
 0x33f   :  { %1056 = vmatprep.subr.mxu0 %v1278_v0 }
 0x340   :  { %1057 = vmatpush3.msra.mxu0 %v676_v30 }
 0x341   :  { %1058 = vmatprep.subr.mxu0 %v1278_v0 }
 0x342   :  { %1059 = vmatpush3.msra.mxu0 %v675_v38 }
 0x343   :  { %1060 = vmatprep.subr.mxu0 %v1278_v0 }
 0x344   :  { %1061 = vmatpush3.msra.mxu0 %v674_v39 }
 0x345   :  { %1062 = vmatprep.subr.mxu0 %v1278_v0 }
 0x346   :  { %1063 = vmatpush3.msra.mxu0 %v673_v40 }
 0x3e7   :  { %v562_v31 = vpop.f32.mrf.mxu0 }
 0x3e8   :  { %v563_v33 = vadd.f32 %v562_v31, %v489_v12 }
 0x3e9   :  { %v996_v34 = vpop.f32.mrf.mxu0 }
 0x3ea   :  { %v573_v35 = vadd.f32 %v832_v32, %v563_v33 }
 0x3ec   :  { %v575_v36 = vmul.f32 0.1, %v573_v35  ;;  %vm574_vm7 = vcmp.gt.f32.partialorder %v573_v35, 0.0 }
 0x3ee   :  { %v576_v37 = vsel %vm574_vm7, %v573_v35, %v575_v36 }
 0x3ef   :  { %1030 = vmatmul.mubr.f32.vlgmr.msra.gmra.mxu1 %v576_v37 }
 0x4af   :  { %v666_v42 = vpop.f32.mrf.mxu1 }
 0x4b0   :  { %v667_v43 = vadd.f32 %v833_v41, %v666_v42 }
 0x4b1   :  { %v1031_v44 = vpop.f32.mrf.mxu1 }
 0x4b2   :  { %vm670_vm8 = vcmp.gt.f32.partialorder %v667_v43, 0.0  ;;  %v671_v45 = vmul.f32 0.1, %v667_v43 }
 0x4b4   :  { %v672_v46 = vsel %vm670_vm8, %v667_v43, %v671_v45 }
 0x4b5   :  { %1065 = vmatmul.mubr.f32.vlgmr.msra.gmra.mxu0 %v672_v46 }
 0x4b6   :  { %1192 = shalt.err (!%p1189_p1)
}
 0x4b7   :  { %786 = dma.vmem_to_hbm [thread:$0]  %s784_s7, 128, %s1733_s17, [#allocation13]  }
 0x4b8   :  { %s1282_s13 = smov [#allocation14]   ;;  %s1283_s1 = smov [#allocation15]  }
 0x4b9   :  { %s793_s30 = sshll.u32 %s1282_s13, 4  ;;  %s803_s10 = sshll.u32 %s1283_s1, 4  ;;  %s794_s30 = int_to_ptr.vmem [resolvable:$true] %s793_s30  ;;  %s804_s10 = int_to_ptr.vmem [resolvable:$true] %s803_s10 }
 0x4ba   :  { %s1201_s22 = scalar_lea.vmem %s794_s30, 128  ;;  %p1206_p3 = scmp.lt.s32.totalorder %s794_s30, %s794_s30 }
 0x4bb   :  { %p1202_p2 = scmp.ne.s32.totalorder %s794_s30, %s1201_s22  ;;  %p1207_p4 = scmp.lt.s32.totalorder %s1201_s22, %s1201_s22 }
 0x4bd   :  { %p1208_p5 = por %p1207_p4, %p1206_p3 }
 0x4bf   :  { %p1209_p6 = pnand %p1208_p5, %p1202_p2 }
 0x4c1   :  { %1212 = shalt.err (!%p1209_p6)
}
 0x4c2   :  { %796 = dma.vmem_to_hbm [thread:$0]  %s794_s30, 128, %s1734_s18, [#allocation13]  }
 0x4c3   :  { %s1221_s8 = scalar_lea.vmem %s804_s10, 128  ;;  %p1226_p8 = scmp.lt.s32.totalorder %s804_s10, %s804_s10 }
 0x4c4   :  { %p1222_p7 = scmp.ne.s32.totalorder %s804_s10, %s1221_s8  ;;  %p1227_p9 = scmp.lt.s32.totalorder %s1221_s8, %s1221_s8 }
 0x4c6   :  { %p1228_p10 = por %p1227_p9, %p1226_p8 }
 0x4c8   :  { %p1229_p11 = pnand %p1228_p10, %p1222_p7 }
 0x4ca   :  { %1232 = shalt.err (!%p1229_p11)
}
 0x4cb   :  { %806 = dma.vmem_to_hbm [thread:$0]  %s804_s10, 128, %s1735_s19, [#allocation16]   ;;  %v834_v0 = vld [vmem:[%s1731_s15] ss:$0 sm:$0xff] }
 0x4cc   :  { %s1284_s24 = smov [#allocation11]  }
 0x4cd   :  { %s773_s25 = sshll.u32 %s1284_s24, 4  ;;  %s774_s25 = int_to_ptr.vmem [resolvable:$true] %s773_s25 }
 0x4ce   :  { %s1241_s18 = scalar_lea.vmem %s774_s25, 128  ;;  %p1246_p13 = scmp.lt.s32.totalorder %s774_s25, %s774_s25 }
 0x4cf   :  { %p1242_p12 = scmp.ne.s32.totalorder %s774_s25, %s1241_s18  ;;  %p1247_p0 = scmp.lt.s32.totalorder %s1241_s18, %s1241_s18 }
 0x4d1   :  { %p1248_p1 = por %p1247_p0, %p1246_p13 }
 0x4d3   :  { %p1249_p2 = pnand %p1248_p1, %p1242_p12 }
 0x575   :  { %v762_v47 = vpop.f32.mrf.mxu0 }
 0x576   :  { %v763_v48 = vadd.f32 %v834_v0, %v762_v47 }
 0x577   :  { %v1066_v49 = vpop.f32.mrf.mxu0 }
 0x578   :  { %766 = vst.msk [vmem:[#allocation11] sm:$0xff] %vm128_vm1, %v763_v48 }
 0x579   :  { %1252 = shalt.err (!%p1249_p2)
}
 0x57a   :  { %776 = dma.vmem_to_hbm [thread:$0]  %s774_s25, 128, %s1732_s16, [#allocation4]  }
 0x57b   :  { %1267 = dma.done.wait [#allocation4], 128  }
 0x57c   :  { %1268 = vsyncadd [#allocation4], 4294967168 }
 0x57d   :  { %1269 = dma.done.wait [#allocation13], 256  }
 0x57e   :  { %1270 = vsyncadd [#allocation13], 4294967040 }
 0x57f   :  { %1271 = dma.done.wait [#allocation16], 128  }
 0x580   :  { %1272 = vsyncadd [#allocation16], 4294967168 }
 0x581   :  { %819 = vsyncpa [#allocation3], 1 }
 0x582   :  { %820 = vsyncpa [#allocation6], 1 }
 0x583   :  { %821 = vsyncpa [#allocation9], 1 }
 0x584   :  { %822 = vsyncpa [#allocation4], 1 }
 0x585   :  { %823 = vsyncpa [#allocation13], 1 }
 0x586   :  { %824 = vsyncpa [#allocation16], 1 }

</bundles_post_ra>
